<compile_context>
chip_gen: v7x
topology: tpu7x:2x2x1
jax: 0.10.0
libtpu: 0.0.40
codegen_flags: <defaults>
</compile_context>

<pallas_src>
import functools

import jax
import jax.numpy as jnp
from jax.experimental import pallas as pl
from jax.experimental.pallas import tpu as pltpu

D_MODEL = 64
D_FF = 512
LN_EPS = 1e-5
FF_CHUNK = 128          # d_ff processed 128 columns at a time (4 chunks)
DEFAULT_TILE_M = 512    # rows per grid step (multiple of 8)


def _round_up(x, m):
    return ((x + m - 1) // m) * m


# ---------------------------------------------------------------------------
# Kernel: one TILE_M-row slab of tokens -> fused FFN + residual + LayerNorm.
#   x_ref  : (TILE_M, D_MODEL)  activations (f32)
#   w1_ref : (D_MODEL, D_FF)    first Linear, pre-transposed to (in, out)
#   w2_ref : (D_FF, D_MODEL)    second Linear, pre-transposed to (in, out)
#   out_ref: (TILE_M, D_MODEL)
# ---------------------------------------------------------------------------
def poswise_ffn_kernel(x_ref, w1_ref, w2_ref, out_ref, *, use_bf16_mxu):
    x = x_ref[...]                                           # (TM, D) f32
    mxu_dtype = jnp.bfloat16 if use_bf16_mxu else jnp.float32
    x_in = x.astype(mxu_dtype)

    # Chunked d_ff: never materialize the full (TILE_M, 512) intermediate.
    acc = jnp.zeros((x.shape[0], D_MODEL), jnp.float32)
    for c in range(0, D_FF, FF_CHUNK):
        w1_c = w1_ref[:, c:c + FF_CHUNK].astype(mxu_dtype)   # (D, C)
        w2_c = w2_ref[c:c + FF_CHUNK, :].astype(mxu_dtype)   # (C, D)
        h_c = jnp.dot(x_in, w1_c, preferred_element_type=jnp.float32)
        h_c = jnp.maximum(h_c, 0.0)                          # ReLU (VPU)
        acc = acc + jnp.dot(h_c.astype(mxu_dtype), w2_c,
                            preferred_element_type=jnp.float32)

    # Residual + LayerNorm(d_model) in f32 (fresh module -> gamma=1, beta=0).
    y = acc + x
    mu = jnp.mean(y, axis=-1, keepdims=True)
    var = jnp.mean((y - mu) ** 2, axis=-1, keepdims=True)
    out_ref[...] = (y - mu) * jax.lax.rsqrt(var + LN_EPS)


def poswise_ffn(x, w1, w2, *, tile_m=DEFAULT_TILE_M, use_bf16_mxu=False):
    """x: (B, L, D_MODEL) f32; w1: (D_MODEL, D_FF); w2: (D_FF, D_MODEL)."""
    B, L, D = x.shape
    assert D == D_MODEL and w1.shape == (D_MODEL, D_FF) and w2.shape == (D_FF, D_MODEL)
    M = B * L
    x2 = x.reshape(M, D)

    # Tile choice: single tile for small M, otherwise TILE_M-row slabs.
    tm = min(tile_m, _round_up(M, 8))
    tm = _round_up(tm, 8)
    m_pad = _round_up(M, tm)
    if m_pad != M:
        # Zero rows stay finite through the LN (var=0, rsqrt(eps)) and are
        # sliced away below.
        x2 = jnp.pad(x2, ((0, m_pad - M), (0, 0)))
    grid = (m_pad // tm,)

    flops = 4 * m_pad * D_MODEL * D_FF                       # two matmuls
    bytes_accessed = 4 * (m_pad * D + D_MODEL * D_FF + D_FF * D_MODEL + m_pad * D)

    kernel = functools.partial(poswise_ffn_kernel, use_bf16_mxu=use_bf16_mxu)
    out = pl.pallas_call(
        kernel,
        out_shape=jax.ShapeDtypeStruct((m_pad, D), jnp.float32),
        grid=grid,
        in_specs=[
            pl.BlockSpec((tm, D), lambda i: (i, 0)),          # x tile
            pl.BlockSpec((D_MODEL, D_FF), lambda i: (0, 0)),  # w1 (resident)
            pl.BlockSpec((D_FF, D_MODEL), lambda i: (0, 0)),  # w2 (resident)
        ],
        out_specs=pl.BlockSpec((tm, D), lambda i: (i, 0)),
        compiler_params=pltpu.CompilerParams(
            dimension_semantics=("parallel",)),
        cost_estimate=pl.CostEstimate(
            flops=flops, transcendentals=0, bytes_accessed=bytes_accessed),
    )(x2, w1, w2)

    return out[:M].reshape(B, L, D)


# Pure-JAX reference (matches the PyTorch forward).
def poswise_ffn_ref(x, w1, w2):
    h = jnp.maximum(x @ w1, 0.0)
    y = h @ w2 + x
    mu = jnp.mean(y, axis=-1, keepdims=True)
    var = jnp.mean((y - mu) ** 2, axis=-1, keepdims=True)
    return (y - mu) * jax.lax.rsqrt(var + LN_EPS)


if __name__ == "__main__":
    key = jax.random.PRNGKey(0)
    kx, k1, k2, kx2 = jax.random.split(key, 4)

    # nn.Linear stores weight as (out, in); pre-transposed here to (in, out).
    w1 = jax.random.normal(k1, (D_MODEL, D_FF), jnp.float32) * 0.05
    w2 = jax.random.normal(k2, (D_FF, D_MODEL), jnp.float32) * 0.05

    fwd = jax.jit(functools.partial(poswise_ffn, use_bf16_mxu=False))

    # Case 1: small M (single-tile path), matches the module's typical shape.
    B1, L1 = 2, 49                                   # [batch, seq_len, d_model]
    x1 = jax.random.normal(kx, (B1, L1, D_MODEL), jnp.float32)
    out1 = fwd(x1, w1, w2)
    jax.block_until_ready(out1)
    assert out1.shape == (B1, L1, D_MODEL)
    ref1 = poswise_ffn_ref(x1, w1, w2)
    assert jnp.allclose(out1, ref1, atol=1e-4, rtol=1e-4), "mismatch (small M)"

    # Case 2: larger M exercising the multi-tile grid + padding path.
    B2, L2 = 4, 300                                  # M = 1200 -> 3 tiles of 512
    x2 = jax.random.normal(kx2, (B2, L2, D_MODEL), jnp.float32)
    out2 = fwd(x2, w1, w2)
    jax.block_until_ready(out2)
    assert out2.shape == (B2, L2, D_MODEL)
    ref2 = poswise_ffn_ref(x2, w1, w2)
    assert jnp.allclose(out2, ref2, atol=1e-4, rtol=1e-4), "mismatch (multi-tile)"

    print("KERNEL_OK")
</pallas_src>

<mosaic_0001>
module attributes {stable_mosaic.version = 11 : i64} {
  func.func @poswise_ffn_kernel(%arg0: i32, %arg1: memref<104x64xf32, #tpu.memory_space<vmem>>, %arg2: memref<64x512xf32, #tpu.memory_space<vmem>>, %arg3: memref<512x64xf32, #tpu.memory_space<vmem>>, %arg4: memref<104x64xf32, #tpu.memory_space<vmem>>) attributes {dimension_semantics = [#tpu.dimension_semantics<parallel>], iteration_bounds = array<i64: 1>, scalar_prefetch = 0 : i64, scratch_operands = 0 : i64, tpu.core_type = #tpu.core_type<tc>, window_params = [{transform_indices = @transform_0, window_bounds = array<i64: 104, 64>}, {pipeline_mode = #tpu.pipeline_mode<synchronous>, transform_indices = @transform_1, window_bounds = array<i64: 64, 512>}, {pipeline_mode = #tpu.pipeline_mode<synchronous>, transform_indices = @transform_2, window_bounds = array<i64: 512, 64>}, {transform_indices = @transform_3, window_bounds = array<i64: 104, 64>}]} {
    %c0 = arith.constant 0 : index
    %c0_0 = arith.constant 0 : index
    %0 = vector.load %arg1[%c0, %c0_0] : memref<104x64xf32, #tpu.memory_space<vmem>>, vector<104x64xf32>
    %cst = arith.constant 0.000000e+00 : f32
    %1 = vector.broadcast %cst : f32 to vector<104x64xf32>
    %c0_1 = arith.constant 0 : index
    %c0_2 = arith.constant 0 : index
    %2 = vector.load %arg2[%c0_1, %c0_2] : memref<64x512xf32, #tpu.memory_space<vmem>>, vector<64x128xf32>
    %c0_3 = arith.constant 0 : index
    %c0_4 = arith.constant 0 : index
    %3 = vector.load %arg3[%c0_3, %c0_4] : memref<512x64xf32, #tpu.memory_space<vmem>>, vector<128x64xf32>
    %cst_5 = arith.constant dense<0.000000e+00> : vector<104x128xf32>
    %4 = tpu.matmul %0, %2, %cst_5 {dimension_numbers = #tpu.dot_dimension_numbers<[1], [0], [0], [1], [0, 0, 1, 1], [], []>} : vector<104x64xf32>, vector<64x128xf32>, vector<104x128xf32> -> vector<104x128xf32>
    %cst_6 = arith.constant 0.000000e+00 : f32
    %5 = vector.broadcast %cst_6 : f32 to vector<104x128xf32>
    %6 = arith.maximumf %4, %5 : vector<104x128xf32>
    %cst_7 = arith.constant dense<0.000000e+00> : vector<104x64xf32>
    %7 = tpu.matmul %6, %3, %cst_7 {dimension_numbers = #tpu.dot_dimension_numbers<[1], [0], [0], [1], [0, 0, 1, 1], [], []>} : vector<104x128xf32>, vector<128x64xf32>, vector<104x64xf32> -> vector<104x64xf32>
    %8 = arith.addf %1, %7 : vector<104x64xf32>
    %c0_8 = arith.constant 0 : index
    %c128 = arith.constant 128 : index
    %9 = vector.load %arg2[%c0_8, %c128] : memref<64x512xf32, #tpu.memory_space<vmem>>, vector<64x128xf32>
    %c128_9 = arith.constant 128 : index
    %c0_10 = arith.constant 0 : index
    %10 = vector.load %arg3[%c128_9, %c0_10] : memref<512x64xf32, #tpu.memory_space<vmem>>, vector<128x64xf32>
    %cst_11 = arith.constant dense<0.000000e+00> : vector<104x128xf32>
    %11 = tpu.matmul %0, %9, %cst_11 {dimension_numbers = #tpu.dot_dimension_numbers<[1], [0], [0], [1], [0, 0, 1, 1], [], []>} : vector<104x64xf32>, vector<64x128xf32>, vector<104x128xf32> -> vector<104x128xf32>
    %cst_12 = arith.constant 0.000000e+00 : f32
    %12 = vector.broadcast %cst_12 : f32 to vector<104x128xf32>
    %13 = arith.maximumf %11, %12 : vector<104x128xf32>
    %cst_13 = arith.constant dense<0.000000e+00> : vector<104x64xf32>
    %14 = tpu.matmul %13, %10, %cst_13 {dimension_numbers = #tpu.dot_dimension_numbers<[1], [0], [0], [1], [0, 0, 1, 1], [], []>} : vector<104x128xf32>, vector<128x64xf32>, vector<104x64xf32> -> vector<104x64xf32>
    %15 = arith.addf %8, %14 : vector<104x64xf32>
    %c0_14 = arith.constant 0 : index
    %c256 = arith.constant 256 : index
    %16 = vector.load %arg2[%c0_14, %c256] : memref<64x512xf32, #tpu.memory_space<vmem>>, vector<64x128xf32>
    %c256_15 = arith.constant 256 : index
    %c0_16 = arith.constant 0 : index
    %17 = vector.load %arg3[%c256_15, %c0_16] : memref<512x64xf32, #tpu.memory_space<vmem>>, vector<128x64xf32>
    %cst_17 = arith.constant dense<0.000000e+00> : vector<104x128xf32>
    %18 = tpu.matmul %0, %16, %cst_17 {dimension_numbers = #tpu.dot_dimension_numbers<[1], [0], [0], [1], [0, 0, 1, 1], [], []>} : vector<104x64xf32>, vector<64x128xf32>, vector<104x128xf32> -> vector<104x128xf32>
    %cst_18 = arith.constant 0.000000e+00 : f32
    %19 = vector.broadcast %cst_18 : f32 to vector<104x128xf32>
    %20 = arith.maximumf %18, %19 : vector<104x128xf32>
    %cst_19 = arith.constant dense<0.000000e+00> : vector<104x64xf32>
    %21 = tpu.matmul %20, %17, %cst_19 {dimension_numbers = #tpu.dot_dimension_numbers<[1], [0], [0], [1], [0, 0, 1, 1], [], []>} : vector<104x128xf32>, vector<128x64xf32>, vector<104x64xf32> -> vector<104x64xf32>
    %22 = arith.addf %15, %21 : vector<104x64xf32>
    %c0_20 = arith.constant 0 : index
    %c384 = arith.constant 384 : index
    %23 = vector.load %arg2[%c0_20, %c384] : memref<64x512xf32, #tpu.memory_space<vmem>>, vector<64x128xf32>
    %c384_21 = arith.constant 384 : index
    %c0_22 = arith.constant 0 : index
    %24 = vector.load %arg3[%c384_21, %c0_22] : memref<512x64xf32, #tpu.memory_space<vmem>>, vector<128x64xf32>
    %cst_23 = arith.constant dense<0.000000e+00> : vector<104x128xf32>
    %25 = tpu.matmul %0, %23, %cst_23 {dimension_numbers = #tpu.dot_dimension_numbers<[1], [0], [0], [1], [0, 0, 1, 1], [], []>} : vector<104x64xf32>, vector<64x128xf32>, vector<104x128xf32> -> vector<104x128xf32>
    %cst_24 = arith.constant 0.000000e+00 : f32
    %26 = vector.broadcast %cst_24 : f32 to vector<104x128xf32>
    %27 = arith.maximumf %25, %26 : vector<104x128xf32>
    %cst_25 = arith.constant dense<0.000000e+00> : vector<104x64xf32>
    %28 = tpu.matmul %27, %24, %cst_25 {dimension_numbers = #tpu.dot_dimension_numbers<[1], [0], [0], [1], [0, 0, 1, 1], [], []>} : vector<104x128xf32>, vector<128x64xf32>, vector<104x64xf32> -> vector<104x64xf32>
    %29 = arith.addf %22, %28 : vector<104x64xf32>
    %30 = arith.addf %29, %0 : vector<104x64xf32>
    %cst_26 = arith.constant dense<0.000000e+00> : vector<104xf32>
    %31 = vector.multi_reduction <add>, %30, %cst_26 [1] : vector<104x64xf32> to vector<104xf32>
    %32 = vector.shape_cast %31 : vector<104xf32> to vector<104x1xf32>
    %cst_27 = arith.constant 6.400000e+01 : f32
    %33 = vector.broadcast %cst_27 : f32 to vector<104x1xf32>
    %34 = arith.divf %32, %33 : vector<104x1xf32>
    %35 = vector.broadcast %34 : vector<104x1xf32> to vector<104x64xf32>
    %36 = arith.subf %30, %35 : vector<104x64xf32>
    %37 = arith.mulf %36, %36 : vector<104x64xf32>
    %cst_28 = arith.constant dense<0.000000e+00> : vector<104xf32>
    %38 = vector.multi_reduction <add>, %37, %cst_28 [1] : vector<104x64xf32> to vector<104xf32>
    %39 = vector.shape_cast %38 : vector<104xf32> to vector<104x1xf32>
    %cst_29 = arith.constant 6.400000e+01 : f32
    %40 = vector.broadcast %cst_29 : f32 to vector<104x1xf32>
    %41 = arith.divf %39, %40 : vector<104x1xf32>
    %42 = vector.broadcast %34 : vector<104x1xf32> to vector<104x64xf32>
    %43 = arith.subf %30, %42 : vector<104x64xf32>
    %cst_30 = arith.constant 9.99999974E-6 : f32
    %44 = vector.broadcast %cst_30 : f32 to vector<104x1xf32>
    %45 = arith.addf %41, %44 : vector<104x1xf32>
    %46 = math.rsqrt %45 : vector<104x1xf32>
    %47 = vector.broadcast %46 : vector<104x1xf32> to vector<104x64xf32>
    %48 = arith.mulf %43, %47 : vector<104x64xf32>
    %c0_31 = arith.constant 0 : index
    %c0_32 = arith.constant 0 : index
    %49 = vector.load %arg4[%c0_31, %c0_32] : memref<104x64xf32, #tpu.memory_space<vmem>>, vector<104x64xf32>
    tpu.vector_store %arg4[%c0_31, %c0_32], %48 {strides = array<i32>} : memref<104x64xf32, #tpu.memory_space<vmem>>, vector<104x64xf32>,
    return
  }
  func.func @transform_0(%arg0: i32) -> (i32, i32) {
    %c0_i32 = arith.constant 0 : i32
    %c0_i32_0 = arith.constant 0 : i32
    return %arg0, %c0_i32 : i32, i32
  }
  func.func @transform_1(%arg0: i32) -> (i32, i32) {
    %c0_i32 = arith.constant 0 : i32
    %c0_i32_0 = arith.constant 0 : i32
    %c0_i32_1 = arith.constant 0 : i32
    return %c0_i32, %c0_i32_0 : i32, i32
  }
  func.func @transform_2(%arg0: i32) -> (i32, i32) {
    %c0_i32 = arith.constant 0 : i32
    %c0_i32_0 = arith.constant 0 : i32
    %c0_i32_1 = arith.constant 0 : i32
    return %c0_i32, %c0_i32_0 : i32, i32
  }
  func.func @transform_3(%arg0: i32) -> (i32, i32) {
    %c0_i32 = arith.constant 0 : i32
    %c0_i32_0 = arith.constant 0 : i32
    return %arg0, %c0_i32 : i32, i32
  }
}

</mosaic_0001>

<bundles_post_ra>
// kernel: poswise_ffn.1
= control target key start
LH: loop header
LB: loop body
LE: loop exit
PB: predicated region body
PF: predicated region fallthrough
CT: control target
= control target key end

     0   :  { %v2423_v0 = vmov 0.0|0.0   ;;  %vm2424_vm0 = vmmov 0   ;;  %v2425_v8 = vmov 0.0   ;;  %vm51_vm1 = vcmask 523264   ;;  %s3450_s1 = inlined_call_operand.vmem [shape: f32[64,512], index: 1, kind: input, shape index: {}]   ;;  %s3451_s2 = inlined_call_operand.vmem [shape: f32[512,64], index: 2, kind: input, shape index: {}]   ;;  %s3452_s0 = inlined_call_operand.vmem [shape: f32[104,64], index: 0, kind: input, shape index: {}]   ;;  %s3453_s3 = inlined_call_operand.vmem [shape: f32[104,64], index: 3, kind: output, shape index: {}]  }
   0x1   :  { %2237 = vmatprep.subr.bf16.mxu0 %v2423_v0  ;;  %2249 = vmatprep.subr.bf16.mxu1 %v2423_v0  ;;  %v27_v1 = vld [vmem:[%s3450_s1] sm:$0xff]  ;;  %v234_v3 = vld [vmem:[%s3450_s1 + $0x8] sm:$0xff]  ;;  %v244_v32 = vld [vmem:[%s3451_s2 + $0x90] sm:$0xff] }
   0x2   :  { %v28_v2 = vld [vmem:[%s3450_s1 + $0x20] sm:$0xff]  ;;  %v235_v5 = vld [vmem:[%s3450_s1 + $0x28] sm:$0xff]  ;;  %1749 = vmatprep.mubr.msk.f32.mxu0 %vm2424_vm0, %v2425_v8  ;;  %1804 = vmatprep.mubr.msk.f32.mxu1 %vm2424_vm0, %v2425_v8  ;;  %v245_v33 = vld [vmem:[%s3451_s2 + $0x98] sm:$0xff] }
   0x3   :  { %v2238_v4 = vpack.c.bf16 %v28_v2, %v27_v1  ;;  %v29_v6 = vld [vmem:[%s3450_s1 + $0x40] sm:$0xff]  ;;  %v2250_v9 = vpack.c.bf16 %v235_v5, %v234_v3  ;;  %v236_v10 = vld [vmem:[%s3450_s1 + $0x48] sm:$0xff]  ;;  %v37_v35 = vld [vmem:[%s3451_s2 + $0x10] sm:$0xff]  ;;  %v2265_v38 = vpack.c.bf16 %v245_v33, %v244_v32 }
   0x4   :  { %v30_v7 = vld [vmem:[%s3450_s1 + $0x60] sm:$0xff]  ;;  %v237_v11 = vld [vmem:[%s3450_s1 + $0x68] sm:$0xff]  ;;  %v38_v36 = vld [vmem:[%s3451_s2 + $0x18] sm:$0xff] }
   0x5   :  { %2239 = vmatpush3.bf16.msra.mxu0 %v2238_v4  ;;  %v2241_v12 = vpack.c.bf16 %v30_v7, %v29_v6  ;;  %2251 = vmatpush3.bf16.msra.mxu1 %v2250_v9  ;;  %v2253_v13 = vpack.c.bf16 %v237_v11, %v236_v10  ;;  %v31_v14 = vld [vmem:[%s3450_s1 + $0x80] sm:$0xff]  ;;  %v238_v16 = vld [vmem:[%s3450_s1 + $0x88] sm:$0xff]  ;;  %v2289_v41 = vpack.c.bf16 %v38_v36, %v37_v35  ;;  %v2573_v44 = vld [vmem:[%s3452_s0 + $0x10] sm:$0xff] }
   0x6   :  { %2240 = vmatprep.subr.bf16.mxu0 %v2423_v0  ;;  %v32_v15 = vld [vmem:[%s3450_s1 + $0xa0] sm:$0xff]  ;;  %2252 = vmatprep.subr.bf16.mxu1 %v2423_v0  ;;  %v239_v17 = vld [vmem:[%s3450_s1 + $0xa8] sm:$0xff]  ;;  %v248_v46 = vld [vmem:[%s3451_s2 + $0xb0] sm:$0xff] }
   0x7   :  { %v2244_v18 = vpack.c.bf16 %v32_v15, %v31_v14  ;;  %v2256_v19 = vpack.c.bf16 %v239_v17, %v238_v16  ;;  %v33_v20 = vld [vmem:[%s3450_s1 + $0xc0] sm:$0xff]  ;;  %v240_v22 = vld [vmem:[%s3450_s1 + $0xc8] sm:$0xff]  ;;  %v249_v47 = vld [vmem:[%s3451_s2 + $0xb8] sm:$0xff] }
   0x8   :  { %v34_v21 = vld [vmem:[%s3450_s1 + $0xe0] sm:$0xff]  ;;  %v241_v23 = vld [vmem:[%s3450_s1 + $0xe8] sm:$0xff]  ;;  %v41_v49 = vld [vmem:[%s3451_s2 + $0x30] sm:$0xff]  ;;  %v2271_v52 = vpack.c.bf16 %v249_v47, %v248_v46 }
   0x9   :  { %2242 = vmatpush3.bf16.msra.mxu0 %v2241_v12  ;;  %2254 = vmatpush3.bf16.msra.mxu1 %v2253_v13  ;;  %v2247_v24 = vpack.c.bf16 %v34_v21, %v33_v20  ;;  %v2259_v25 = vpack.c.bf16 %v241_v23, %v240_v22  ;;  %v242_v26 = vld [vmem:[%s3451_s2 + $0x80] sm:$0xff]  ;;  %v243_v27 = vld [vmem:[%s3451_s2 + $0x88] sm:$0xff]  ;;  %v42_v50 = vld [vmem:[%s3451_s2 + $0x38] sm:$0xff] }
   0xa   :  { %2243 = vmatprep.subr.bf16.mxu0 %v2423_v0  ;;  %2255 = vmatprep.subr.bf16.mxu1 %v2423_v0  ;;  %v35_v28 = vld [vmem:[%s3451_s2] sm:$0xff]  ;;  %v36_v29 = vld [vmem:[%s3451_s2 + $0x8] sm:$0xff]  ;;  %v2262_v31 = vpack.c.bf16 %v243_v27, %v242_v26  ;;  %v2600_v51 = vld [vmem:[%s3452_s0 + $0x18] sm:$0xff]  ;;  %v2295_v55 = vpack.c.bf16 %v42_v50, %v41_v49 }
   0xb   :  { %v2521_v30 = vld [vmem:[%s3452_s0] sm:$0xff]  ;;  %v2286_v34 = vpack.c.bf16 %v36_v29, %v35_v28  ;;  %v2546_v37 = vld [vmem:[%s3452_s0 + $0x8] sm:$0xff]  ;;  %v252_v60 = vld [vmem:[%s3451_s2 + $0xd0] sm:$0xff] }
   0xc   :  { %v246_v39 = vld [vmem:[%s3451_s2 + $0xa0] sm:$0xff]  ;;  %v247_v40 = vld [vmem:[%s3451_s2 + $0xa8] sm:$0xff]  ;;  %v253_v61 = vld [vmem:[%s3451_s2 + $0xd8] sm:$0xff] }
   0xd   :  { %2245 = vmatpush3.bf16.msra.mxu0 %v2244_v18  ;;  %2257 = vmatpush3.bf16.msra.mxu1 %v2256_v19  ;;  %v39_v42 = vld [vmem:[%s3451_s2 + $0x20] sm:$0xff]  ;;  %v40_v43 = vld [vmem:[%s3451_s2 + $0x28] sm:$0xff]  ;;  %v2268_v45 = vpack.c.bf16 %v247_v40, %v246_v39  ;;  %v45_v63 = vld [vmem:[%s3451_s2 + $0x50] sm:$0xff]  ;;  %v2277_v3 = vpack.c.bf16 %v253_v61, %v252_v60 }
   0xe   :  { %2246 = vmatprep.subr.bf16.mxu0 %v2423_v0  ;;  %2258 = vmatprep.subr.bf16.mxu1 %v2423_v0  ;;  %v2292_v48 = vpack.c.bf16 %v40_v43, %v39_v42  ;;  %v250_v53 = vld [vmem:[%s3451_s2 + $0xc0] sm:$0xff]  ;;  %v251_v54 = vld [vmem:[%s3451_s2 + $0xc8] sm:$0xff]  ;;  %v46_v1 = vld [vmem:[%s3451_s2 + $0x58] sm:$0xff] }
   0xf   :  { %v43_v56 = vld [vmem:[%s3451_s2 + $0x40] sm:$0xff]  ;;  %v44_v57 = vld [vmem:[%s3451_s2 + $0x48] sm:$0xff]  ;;  %v2274_v59 = vpack.c.bf16 %v251_v54, %v250_v53  ;;  %v2301_v6 = vpack.c.bf16 %v46_v1, %v45_v63  ;;  %v2681_v10 = vld [vmem:[%s3452_s0 + $0x30] sm:$0xff] }
  0x10   :  { %v2627_v58 = vld [vmem:[%s3452_s0 + $0x20] sm:$0xff]  ;;  %v2298_v62 = vpack.c.bf16 %v44_v57, %v43_v56  ;;  %v2654_v2 = vld [vmem:[%s3452_s0 + $0x28] sm:$0xff]  ;;  %v256_v13 = vld [vmem:[%s3451_s2 + $0xf0] sm:$0xff] }
  0x11   :  { %2248 = vmatpush3.bf16.msra.mxu0 %v2247_v24  ;;  %2260 = vmatpush3.bf16.msra.mxu1 %v2259_v25  ;;  %v254_v4 = vld [vmem:[%s3451_s2 + $0xe0] sm:$0xff]  ;;  %v255_v5 = vld [vmem:[%s3451_s2 + $0xe8] sm:$0xff]  ;;  %v257_v14 = vld [vmem:[%s3451_s2 + $0xf8] sm:$0xff] }
  0x12   :  { %2261 = vmatprep.subr.bf16.mxu0 %v2423_v0  ;;  %2285 = vmatprep.subr.bf16.mxu1 %v2423_v0  ;;  %v47_v7 = vld [vmem:[%s3451_s2 + $0x60] sm:$0xff]  ;;  %v48_v9 = vld [vmem:[%s3451_s2 + $0x68] sm:$0xff]  ;;  %v2280_v11 = vpack.c.bf16 %v255_v5, %v254_v4  ;;  %v2702_v15 = vld [vmem:[%s3452_s0 + $0x38] sm:$0xff]  ;;  %v2283_v16 = vpack.c.bf16 %v257_v14, %v256_v13 }
  0x13   :  { %v2304_v12 = vpack.c.bf16 %v48_v9, %v47_v7  ;;  %v2717_v17 = vld [vmem:[%s3452_s0 + $0x40] sm:$0xff]  ;;  %v2731_v18 = vld [vmem:[%s3452_s0 + $0x48] sm:$0xff]  ;;  %v2744_v19 = vld [vmem:[%s3452_s0 + $0x50] sm:$0xff] }
  0x14   :  { %1750 = vmatmul.mubr.msk.f32.vlgmr.msra.gmra.mrb[0].mxu0 %vm51_vm1, %v2521_v30  ;;  %1805 = vmatmul.mubr.msk.f32.vlgmr.msra.gmra.mrb[0].mxu1 %vm51_vm1, %v2521_v30  ;;  %v2757_v20 = vld [vmem:[%s3452_s0 + $0x58] sm:$0xff]  ;;  %v2770_v21 = vld [vmem:[%s3452_s0 + $0x60] sm:$0xff]  ;;  %v49_v22 = vld [vmem:[%s3451_s2 + $0x70] sm:$0xff] }
  0x15   :  { %1752 = vmatprep.mubr.msk.f32.mxu0 %vm2424_vm0, %v2425_v8  ;;  %1807 = vmatprep.mubr.msk.f32.mxu1 %vm2424_vm0, %v2425_v8  ;;  %v50_v23 = vld [vmem:[%s3451_s2 + $0x78] sm:$0xff]  ;;  %v661_v25 = vld [vmem:[%s3450_s1 + $0x10] sm:$0xff] }
  0x16   :  { %2263 = vmatpush3.bf16.msra.mxu0 %v2262_v31  ;;  %2287 = vmatpush3.bf16.msra.mxu1 %v2286_v34  ;;  %v2307_v24 = vpack.c.bf16 %v50_v23, %v49_v22  ;;  %v662_v26 = vld [vmem:[%s3450_s1 + $0x30] sm:$0xff] }
  0x17   :  { %2264 = vmatprep.subr.bf16.mxu0 %v2423_v0  ;;  %2288 = vmatprep.subr.bf16.mxu1 %v2423_v0  ;;  %v2310_v32 = vpack.c.bf16 %v662_v26, %v661_v25  ;;  %v663_v35 = vld [vmem:[%s3450_s1 + $0x50] sm:$0xff] }
  0x18   :  { %1753 = vmatmul.mubr.msk.f32.gmra.mrb[2].mxu0 %vm51_vm1, %v2546_v37  ;;  %1808 = vmatmul.mubr.msk.f32.gmra.mrb[2].mxu1 %vm51_vm1, %v2546_v37  ;;  %v664_v36 = vld [vmem:[%s3450_s1 + $0x70] sm:$0xff] }
  0x19   :  { %1755 = vmatprep.mubr.msk.f32.mxu0 %vm2424_vm0, %v2425_v8  ;;  %1810 = vmatprep.mubr.msk.f32.mxu1 %vm2424_vm0, %v2425_v8  ;;  %v2313_v42 = vpack.c.bf16 %v664_v36, %v663_v35  ;;  %v665_v46 = vld [vmem:[%s3450_s1 + $0x90] sm:$0xff] }
  0x1a   :  { %2266 = vmatpush3.bf16.msra.mxu0 %v2265_v38  ;;  %2290 = vmatpush3.bf16.msra.mxu1 %v2289_v41  ;;  %v666_v47 = vld [vmem:[%s3450_s1 + $0xb0] sm:$0xff] }
  0x1b   :  { %2267 = vmatprep.subr.bf16.mxu0 %v2423_v0  ;;  %2291 = vmatprep.subr.bf16.mxu1 %v2423_v0  ;;  %v2316_v53 = vpack.c.bf16 %v666_v47, %v665_v46  ;;  %v667_v56 = vld [vmem:[%s3450_s1 + $0xd0] sm:$0xff] }
  0x1c   :  { %1756 = vmatmul.mubr.msk.f32.gmra.mrb[4].mxu0 %vm51_vm1, %v2573_v44  ;;  %1811 = vmatmul.mubr.msk.f32.gmra.mrb[4].mxu1 %vm51_vm1, %v2573_v44  ;;  %v668_v57 = vld [vmem:[%s3450_s1 + $0xf0] sm:$0xff] }
  0x1d   :  { %1758 = vmatprep.mubr.msk.f32.mxu0 %vm2424_vm0, %v2425_v8  ;;  %1813 = vmatprep.mubr.msk.f32.mxu1 %vm2424_vm0, %v2425_v8  ;;  %v2319_v63 = vpack.c.bf16 %v668_v57, %v667_v56 }
  0x1e   :  { %2269 = vmatpush3.bf16.msra.mxu0 %v2268_v45  ;;  %2293 = vmatpush3.bf16.msra.mxu1 %v2292_v48 }
  0x1f   :  { %2270 = vmatprep.subr.bf16.mxu0 %v2423_v0  ;;  %2294 = vmatprep.subr.bf16.mxu1 %v2423_v0 }
  0x20   :  { %1759 = vmatmul.mubr.msk.f32.gmra.mrb[6].mxu0 %vm51_vm1, %v2600_v51  ;;  %1814 = vmatmul.mubr.msk.f32.gmra.mrb[6].mxu1 %vm51_vm1, %v2600_v51 }
  0x21   :  { %1761 = vmatprep.mubr.msk.f32.mxu0 %vm2424_vm0, %v2425_v8  ;;  %1816 = vmatprep.mubr.msk.f32.mxu1 %vm2424_vm0, %v2425_v8 }
  0x22   :  { %2272 = vmatpush3.bf16.msra.mxu0 %v2271_v52  ;;  %2296 = vmatpush3.bf16.msra.mxu1 %v2295_v55 }
  0x23   :  { %2273 = vmatprep.subr.bf16.mxu0 %v2423_v0  ;;  %2297 = vmatprep.subr.bf16.mxu1 %v2423_v0 }
  0x24   :  { %1762 = vmatmul.mubr.msk.f32.gmra.mrb[8].mxu0 %vm51_vm1, %v2627_v58  ;;  %1817 = vmatmul.mubr.msk.f32.gmra.mrb[8].mxu1 %vm51_vm1, %v2627_v58 }
  0x25   :  { %1764 = vmatprep.mubr.msk.f32.mxu0 %vm2424_vm0, %v2425_v8  ;;  %1819 = vmatprep.mubr.msk.f32.mxu1 %vm2424_vm0, %v2425_v8 }
  0x26   :  { %2275 = vmatpush3.bf16.msra.mxu0 %v2274_v59  ;;  %2299 = vmatpush3.bf16.msra.mxu1 %v2298_v62 }
  0x27   :  { %2276 = vmatprep.subr.bf16.mxu0 %v2423_v0  ;;  %2300 = vmatprep.subr.bf16.mxu1 %v2423_v0 }
  0x28   :  { %1765 = vmatmul.mubr.msk.f32.gmra.mrb[10].mxu0 %vm51_vm1, %v2654_v2  ;;  %1820 = vmatmul.mubr.msk.f32.gmra.mrb[10].mxu1 %vm51_vm1, %v2654_v2 }
  0x29   :  { %1767 = vmatprep.mubr.msk.f32.mxu0 %vm2424_vm0, %v2425_v8  ;;  %1822 = vmatprep.mubr.msk.f32.mxu1 %vm2424_vm0, %v2425_v8 }
  0x2a   :  { %2278 = vmatpush3.bf16.msra.mxu0 %v2277_v3  ;;  %2302 = vmatpush3.bf16.msra.mxu1 %v2301_v6 }
  0x2b   :  { %2279 = vmatprep.subr.bf16.mxu0 %v2423_v0  ;;  %2303 = vmatprep.subr.bf16.mxu1 %v2423_v0 }
  0x2c   :  { %1768 = vmatmul.mubr.msk.f32.gmra.mrb[12].mxu0 %vm51_vm1, %v2681_v10  ;;  %1823 = vmatmul.mubr.msk.f32.gmra.mrb[12].mxu1 %vm51_vm1, %v2681_v10 }
  0x2d   :  { %1770 = vmatprep.mubr.msk.f32.mxu0 %vm2424_vm0, %v2425_v8  ;;  %1825 = vmatprep.mubr.msk.f32.mxu1 %vm2424_vm0, %v2425_v8 }
  0x2e   :  { %2281 = vmatpush3.bf16.msra.mxu0 %v2280_v11  ;;  %2305 = vmatpush3.bf16.msra.mxu1 %v2304_v12 }
  0x2f   :  { %2282 = vmatprep.subr.bf16.mxu0 %v2423_v0  ;;  %2306 = vmatprep.subr.bf16.mxu1 %v2423_v0 }
  0x30   :  { %1771 = vmatmul.mubr.msk.f32.gmra.mrb[14].mxu0 %vm51_vm1, %v2702_v15  ;;  %1826 = vmatmul.mubr.msk.f32.gmra.mrb[14].mxu1 %vm51_vm1, %v2702_v15 }
  0x31   :  { %1773 = vmatprep.mubr.msk.f32.mxu0 %vm2424_vm0, %v2425_v8  ;;  %1828 = vmatprep.mubr.msk.f32.mxu1 %vm2424_vm0, %v2425_v8 }
  0x32   :  { %2284 = vmatpush3.bf16.msra.mxu0 %v2283_v16  ;;  %2308 = vmatpush3.bf16.msra.mxu1 %v2307_v24 }
  0x33   :  { %2309 = vmatprep.subr.bf16.mxu0 %v2423_v0  ;;  %2321 = vmatprep.subr.bf16.mxu1 %v2423_v0 }
  0x34   :  { %1774 = vmatmul.mubr.msk.f32.gmra.mrb[16].mxu0 %vm51_vm1, %v2717_v17  ;;  %1829 = vmatmul.mubr.msk.f32.gmra.mrb[16].mxu1 %vm51_vm1, %v2717_v17 }
  0x35   :  { %1776 = vmatprep.mubr.msk.f32.mxu0 %vm2424_vm0, %v2425_v8  ;;  %1831 = vmatprep.mubr.msk.f32.mxu1 %vm2424_vm0, %v2425_v8 }
  0x38   :  { %1777 = vmatmul.mubr.msk.f32.gmra.mrb[18].mxu0 %vm51_vm1, %v2731_v18  ;;  %1832 = vmatmul.mubr.msk.f32.gmra.mrb[18].mxu1 %vm51_vm1, %v2731_v18 }
  0x39   :  { %1779 = vmatprep.mubr.msk.f32.mxu0 %vm2424_vm0, %v2425_v8  ;;  %1834 = vmatprep.mubr.msk.f32.mxu1 %vm2424_vm0, %v2425_v8 }
  0x3c   :  { %1780 = vmatmul.mubr.msk.f32.gmra.mrb[20].mxu0 %vm51_vm1, %v2744_v19  ;;  %1835 = vmatmul.mubr.msk.f32.gmra.mrb[20].mxu1 %vm51_vm1, %v2744_v19 }
  0x3d   :  { %1782 = vmatprep.mubr.msk.f32.mxu0 %vm2424_vm0, %v2425_v8  ;;  %1837 = vmatprep.mubr.msk.f32.mxu1 %vm2424_vm0, %v2425_v8 }
  0x40   :  { %1783 = vmatmul.mubr.msk.f32.gmra.mrb[22].mxu0 %vm51_vm1, %v2757_v20  ;;  %1838 = vmatmul.mubr.msk.f32.gmra.mrb[22].mxu1 %vm51_vm1, %v2757_v20 }
  0x41   :  { %1785 = vmatprep.mubr.msk.f32.mxu0 %vm2424_vm0, %v2425_v8  ;;  %1840 = vmatprep.mubr.msk.f32.mxu1 %vm2424_vm0, %v2425_v8 }
  0x44   :  { %1786 = vmatmul.mubr.msk.f32.gmra.mrb[24].mxu0 %vm51_vm1, %v2770_v21  ;;  %1841 = vmatmul.mubr.msk.f32.gmra.mrb[24].mxu1 %vm51_vm1, %v2770_v21 }
  0x45   :  { %1875 = vmatprep.mubr.msk.f32.mxu0 %vm2424_vm0, %v2425_v8  ;;  %1946 = vmatprep.mubr.msk.f32.mxu1 %vm2424_vm0, %v2425_v8 }
  0xe7   :  { %v157_v27 = vpop.f32.mrb[0].mxu0  ;;  %v324_v29 = vpop.f32.mrb[0].mxu1 }
  0xe8   :  { %v221_v28 = vmax.f32 %v157_v27, 0.0  ;;  %v1751_v31 = vpop.f32.mrb[1].mxu0  ;;  %v388_v33 = vmax.f32 %v324_v29, 0.0  ;;  %v1806_v34 = vpop.f32.mrb[1].mxu1 }
  0xea   :  { %1947 = vmatmul.mubr.f32.vlgmr.msra.gmra.mrb[26].mxu1 %v221_v28  ;;  %1876 = vmatmul.mubr.f32.vlgmr.msra.gmra.mrb[26].mxu0 %v388_v33 }
  0xeb   :  { %v162_v38 = vpop.f32.mrb[2].mxu0  ;;  %1949 = vmatprep.mubr.msk.f32.mxu1 %vm2424_vm0, %v2425_v8  ;;  %2311 = vmatpush3.bf16.msra.mxu0 %v2310_v32  ;;  %v329_v40 = vpop.f32.mrb[2].mxu1 }
  0xec   :  { %v222_v39 = vmax.f32 %v162_v38, 0.0  ;;  %1878 = vmatprep.mubr.msk.f32.mxu0 %vm2424_vm0, %v2425_v8  ;;  %v1754_v41 = vpop.f32.mrb[3].mxu0  ;;  %v389_v43 = vmax.f32 %v329_v40, 0.0  ;;  %v1809_v45 = vpop.f32.mrb[3].mxu1  ;;  %2312 = vmatprep.subr.bf16.mxu0 %v2423_v0 }
  0xee   :  { %1950 = vmatmul.mubr.f32.gmra.mrb[28].mxu1 %v222_v39  ;;  %1879 = vmatmul.mubr.f32.gmra.mrb[28].mxu0 %v389_v43 }
  0xef   :  { %v167_v48 = vpop.f32.mrb[4].mxu0  ;;  %1952 = vmatprep.mubr.msk.f32.mxu1 %vm2424_vm0, %v2425_v8  ;;  %v334_v50 = vpop.f32.mrb[4].mxu1  ;;  %1881 = vmatprep.mubr.msk.f32.mxu0 %vm2424_vm0, %v2425_v8 }
  0xf0   :  { %v223_v49 = vmax.f32 %v167_v48, 0.0  ;;  %v1757_v52 = vpop.f32.mrb[5].mxu0  ;;  %2314 = vmatpush3.bf16.msra.mxu0 %v2313_v42  ;;  %v390_v54 = vmax.f32 %v334_v50, 0.0  ;;  %v1812_v55 = vpop.f32.mrb[5].mxu1 }
  0xf1   :  { %2315 = vmatprep.subr.bf16.mxu0 %v2423_v0 }
  0xf2   :  { %1953 = vmatmul.mubr.f32.gmra.mrb[30].mxu1 %v223_v49  ;;  %1882 = vmatmul.mubr.f32.gmra.mrb[30].mxu0 %v390_v54 }
  0xf3   :  { %v172_v59 = vpop.f32.mrb[6].mxu0  ;;  %1955 = vmatprep.mubr.msk.f32.mxu1 %vm2424_vm0, %v2425_v8  ;;  %v339_v61 = vpop.f32.mrb[6].mxu1  ;;  %1884 = vmatprep.mubr.msk.f32.mxu0 %vm2424_vm0, %v2425_v8 }
  0xf4   :  { %v224_v60 = vmax.f32 %v172_v59, 0.0  ;;  %v1760_v62 = vpop.f32.mrb[7].mxu0  ;;  %2317 = vmatpush3.bf16.msra.mxu0 %v2316_v53  ;;  %v391_v1 = vmax.f32 %v339_v61, 0.0  ;;  %v1815_v3 = vpop.f32.mrb[7].mxu1 }
  0xf5   :  { %2318 = vmatprep.subr.bf16.mxu0 %v2423_v0 }
  0xf6   :  { %1956 = vmatmul.mubr.f32.gmra.mrb[32].mxu1 %v224_v60  ;;  %1885 = vmatmul.mubr.f32.gmra.mrb[32].mxu0 %v391_v1 }
  0xf7   :  { %v177_v4 = vpop.f32.mrb[8].mxu0  ;;  %1958 = vmatprep.mubr.msk.f32.mxu1 %vm2424_vm0, %v2425_v8  ;;  %v344_v6 = vpop.f32.mrb[8].mxu1  ;;  %1887 = vmatprep.mubr.msk.f32.mxu0 %vm2424_vm0, %v2425_v8 }
  0xf8   :  { %v225_v5 = vmax.f32 %v177_v4, 0.0  ;;  %v1763_v7 = vpop.f32.mrb[9].mxu0  ;;  %2320 = vmatpush3.bf16.msra.mxu0 %v2319_v63  ;;  %v392_v9 = vmax.f32 %v344_v6, 0.0  ;;  %v1818_v11 = vpop.f32.mrb[9].mxu1 }
  0xf9   :  { %2345 = vmatprep.subr.bf16.mxu0 %v2423_v0  ;;  %v971_v11 = vld [vmem:[%s3450_s1 + $0x18] sm:$0xff] }
  0xfa   :  { %1959 = vmatmul.mubr.f32.gmra.mrb[34].mxu1 %v225_v5  ;;  %1888 = vmatmul.mubr.f32.gmra.mrb[34].mxu0 %v392_v9 }
  0xfb   :  { %v182_v12 = vpop.f32.mrb[10].mxu0  ;;  %1961 = vmatprep.mubr.msk.f32.mxu1 %vm2424_vm0, %v2425_v8  ;;  %v349_v14 = vpop.f32.mrb[10].mxu1  ;;  %1890 = vmatprep.mubr.msk.f32.mxu0 %vm2424_vm0, %v2425_v8 }
  0xfc   :  { %v226_v13 = vmax.f32 %v182_v12, 0.0  ;;  %v1766_v16 = vpop.f32.mrb[11].mxu0  ;;  %v393_v22 = vmax.f32 %v349_v14, 0.0  ;;  %v1821_v23 = vpop.f32.mrb[11].mxu1  ;;  %v972_v12 = vld [vmem:[%s3450_s1 + $0x38] sm:$0xff] }
  0xfd   :  { %v973_v14 = vld [vmem:[%s3450_s1 + $0x58] sm:$0xff] }
  0xfe   :  { %1962 = vmatmul.mubr.f32.gmra.mrb[36].mxu1 %v226_v13  ;;  %1891 = vmatmul.mubr.f32.gmra.mrb[36].mxu0 %v393_v22  ;;  %v2346_v13 = vpack.c.bf16 %v972_v12, %v971_v11  ;;  %v974_v16 = vld [vmem:[%s3450_s1 + $0x78] sm:$0xff] }
  0xff   :  { %v187_v24 = vpop.f32.mrb[12].mxu0  ;;  %1964 = vmatprep.mubr.msk.f32.mxu1 %vm2424_vm0, %v2425_v8  ;;  %v354_v26 = vpop.f32.mrb[12].mxu1  ;;  %1893 = vmatprep.mubr.msk.f32.mxu0 %vm2424_vm0, %v2425_v8  ;;  %v2349_v22 = vpack.c.bf16 %v974_v16, %v973_v14  ;;  %v975_v23 = vld [vmem:[%s3450_s1 + $0x98] sm:$0xff] }
 0x100   :  { %v227_v25 = vmax.f32 %v187_v24, 0.0  ;;  %v1769_v27 = vpop.f32.mrb[13].mxu0  ;;  %v394_v28 = vmax.f32 %v354_v26, 0.0  ;;  %v1824_v29 = vpop.f32.mrb[13].mxu1  ;;  %v976_v24 = vld [vmem:[%s3450_s1 + $0xb8] sm:$0xff] }
 0x101   :  { %v977_v26 = vld [vmem:[%s3450_s1 + $0xd8] sm:$0xff]  ;;  %v669_v29 = vld [vmem:[%s3451_s2 + $0x100] sm:$0xff] }
 0x102   :  { %1965 = vmatmul.mubr.f32.gmra.mrb[38].mxu1 %v227_v25  ;;  %1894 = vmatmul.mubr.f32.gmra.mrb[38].mxu0 %v394_v28  ;;  %v2352_v25 = vpack.c.bf16 %v976_v24, %v975_v23  ;;  %v978_v27 = vld [vmem:[%s3450_s1 + $0xf8] sm:$0xff] }
 0x103   :  { %v192_v31 = vpop.f32.mrb[14].mxu0  ;;  %1967 = vmatprep.mubr.msk.f32.mxu1 %vm2424_vm0, %v2425_v8  ;;  %v359_v33 = vpop.f32.mrb[14].mxu1  ;;  %1896 = vmatprep.mubr.msk.f32.mxu0 %vm2424_vm0, %v2425_v8  ;;  %v2355_v28 = vpack.c.bf16 %v978_v27, %v977_v26 }
 0x104   :  { %v228_v32 = vmax.f32 %v192_v31, 0.0  ;;  %v1772_v34 = vpop.f32.mrb[15].mxu0  ;;  %v395_v35 = vmax.f32 %v359_v33, 0.0  ;;  %v1827_v36 = vpop.f32.mrb[15].mxu1  ;;  %v670_v31 = vld [vmem:[%s3451_s2 + $0x108] sm:$0xff]  ;;  %v671_v33 = vld [vmem:[%s3451_s2 + $0x110] sm:$0xff] }
 0x105   :  { %v672_v34 = vld [vmem:[%s3451_s2 + $0x118] sm:$0xff]  ;;  %v673_v36 = vld [vmem:[%s3451_s2 + $0x120] sm:$0xff] }
 0x106   :  { %1968 = vmatmul.mubr.f32.gmra.mrb[40].mxu1 %v228_v32  ;;  %1897 = vmatmul.mubr.f32.gmra.mrb[40].mxu0 %v395_v35  ;;  %v2322_v32 = vpack.c.bf16 %v670_v31, %v669_v29  ;;  %v2325_v35 = vpack.c.bf16 %v672_v34, %v671_v33 }
 0x107   :  { %v197_v38 = vpop.f32.mrb[16].mxu0  ;;  %1970 = vmatprep.mubr.msk.f32.mxu1 %vm2424_vm0, %v2425_v8  ;;  %v364_v40 = vpop.f32.mrb[16].mxu1  ;;  %1899 = vmatprep.mubr.msk.f32.mxu0 %vm2424_vm0, %v2425_v8 }
 0x108   :  { %v229_v39 = vmax.f32 %v197_v38, 0.0  ;;  %v1775_v41 = vpop.f32.mrb[17].mxu0  ;;  %v396_v42 = vmax.f32 %v364_v40, 0.0  ;;  %v1830_v43 = vpop.f32.mrb[17].mxu1  ;;  %2323 = vmatpush3.bf16.msra.mxu1 %v2322_v32  ;;  %v674_v38 = vld [vmem:[%s3451_s2 + $0x128] sm:$0xff]  ;;  %v675_v40 = vld [vmem:[%s3451_s2 + $0x130] sm:$0xff] }
 0x109   :  { %2324 = vmatprep.subr.bf16.mxu1 %v2423_v0  ;;  %v676_v41 = vld [vmem:[%s3451_s2 + $0x138] sm:$0xff]  ;;  %v678_v43 = vld [vmem:[%s3451_s2 + $0x148] sm:$0xff] }
 0x10a   :  { %1971 = vmatmul.mubr.f32.gmra.mrb[42].mxu1 %v229_v39  ;;  %1900 = vmatmul.mubr.f32.gmra.mrb[42].mxu0 %v396_v42  ;;  %v2328_v39 = vpack.c.bf16 %v674_v38, %v673_v36  ;;  %v2331_v42 = vpack.c.bf16 %v676_v41, %v675_v40 }
 0x10b   :  { %v202_v45 = vpop.f32.mrb[18].mxu0  ;;  %1973 = vmatprep.mubr.msk.f32.mxu1 %vm2424_vm0, %v2425_v8  ;;  %v369_v47 = vpop.f32.mrb[18].mxu1  ;;  %1902 = vmatprep.mubr.msk.f32.mxu0 %vm2424_vm0, %v2425_v8 }
 0x10c   :  { %v230_v46 = vmax.f32 %v202_v45, 0.0  ;;  %v1778_v48 = vpop.f32.mrb[19].mxu0  ;;  %v397_v49 = vmax.f32 %v369_v47, 0.0  ;;  %v1833_v50 = vpop.f32.mrb[19].mxu1  ;;  %2326 = vmatpush3.bf16.msra.mxu1 %v2325_v35  ;;  %v680_v45 = vld [vmem:[%s3451_s2 + $0x158] sm:$0xff] }
 0x10d   :  { %2327 = vmatprep.subr.bf16.mxu1 %v2423_v0  ;;  %v684_v48 = vld [vmem:[%s3451_s2 + $0x178] sm:$0xff] }
 0x10e   :  { %1974 = vmatmul.mubr.f32.gmra.mrb[44].mxu1 %v230_v46  ;;  %1903 = vmatmul.mubr.f32.gmra.mrb[44].mxu0 %v397_v49  ;;  %v682_v46 = vld [vmem:[%s3451_s2 + $0x168] sm:$0xff] }
 0x10f   :  { %v207_v52 = vpop.f32.mrb[20].mxu0  ;;  %1976 = vmatprep.mubr.msk.f32.mxu1 %vm2424_vm0, %v2425_v8  ;;  %v374_v54 = vpop.f32.mrb[20].mxu1  ;;  %1905 = vmatprep.mubr.msk.f32.mxu0 %vm2424_vm0, %v2425_v8 }
 0x110   :  { %v231_v53 = vmax.f32 %v207_v52, 0.0  ;;  %v1781_v55 = vpop.f32.mrb[21].mxu0  ;;  %v398_v56 = vmax.f32 %v374_v54, 0.0  ;;  %v1836_v57 = vpop.f32.mrb[21].mxu1  ;;  %2329 = vmatpush3.bf16.msra.mxu1 %v2328_v39 }
 0x111   :  { %2330 = vmatprep.subr.bf16.mxu1 %v2423_v0 }
 0x112   :  { %1977 = vmatmul.mubr.f32.gmra.mrb[46].mxu1 %v231_v53  ;;  %1906 = vmatmul.mubr.f32.gmra.mrb[46].mxu0 %v398_v56 }
 0x113   :  { %v212_v59 = vpop.f32.mrb[22].mxu0  ;;  %1979 = vmatprep.mubr.msk.f32.mxu1 %vm2424_vm0, %v2425_v8  ;;  %v379_v61 = vpop.f32.mrb[22].mxu1  ;;  %1908 = vmatprep.mubr.msk.f32.mxu0 %vm2424_vm0, %v2425_v8 }
 0x114   :  { %v232_v60 = vmax.f32 %v212_v59, 0.0  ;;  %v1784_v62 = vpop.f32.mrb[23].mxu0  ;;  %v399_v63 = vmax.f32 %v379_v61, 0.0  ;;  %v1839_v1 = vpop.f32.mrb[23].mxu1  ;;  %2332 = vmatpush3.bf16.msra.mxu1 %v2331_v42 }
 0x115   :  { %2333 = vmatprep.subr.bf16.mxu1 %v2423_v0 }
 0x116   :  { %1980 = vmatmul.mubr.f32.gmra.mrb[48].mxu1 %v232_v60  ;;  %1909 = vmatmul.mubr.f32.gmra.mrb[48].mxu0 %v399_v63 }
 0x117   :  { %v217_v3 = vpop.f32.mrb[24].mxu0  ;;  %1982 = vmatprep.mubr.msk.f32.mxu1 %vm2424_vm0, %v2425_v8  ;;  %v384_v5 = vpop.f32.mrb[24].mxu1  ;;  %1911 = vmatprep.mubr.msk.f32.mxu0 %vm2424_vm0, %v2425_v8 }
 0x118   :  { %v233_v4 = vmax.f32 %v217_v3, 0.0  ;;  %v1787_v6 = vpop.f32.mrb[25].mxu0  ;;  %v400_v7 = vmax.f32 %v384_v5, 0.0  ;;  %v1842_v9 = vpop.f32.mrb[25].mxu1 }
 0x11a   :  { %1983 = vmatmul.mubr.f32.gmra.mrb[50].mxu1 %v233_v4  ;;  %1912 = vmatmul.mubr.f32.gmra.mrb[50].mxu0 %v400_v7 }
 0x11b   :  { %2072 = vmatprep.mubr.msk.f32.mxu1 %vm2424_vm0, %v2425_v8  ;;  %2001 = vmatprep.mubr.msk.f32.mxu0 %vm2424_vm0, %v2425_v8 }
 0x11e   :  { %2002 = vmatmul.mubr.msk.f32.vlgmr.msra.gmra.mrb[52].mxu0 %vm51_vm1, %v2521_v30 }
 0x11f   :  { %2347 = vmatpush3.bf16.msra.mxu0 %v2346_v13  ;;  %2004 = vmatprep.mubr.msk.f32.mxu0 %vm2424_vm0, %v2425_v8 }
 0x120   :  { %2348 = vmatprep.subr.bf16.mxu0 %v2423_v0 }
 0x122   :  { %2005 = vmatmul.mubr.msk.f32.gmra.mrb[54].mxu0 %vm51_vm1, %v2546_v37 }
 0x123   :  { %2007 = vmatprep.mubr.msk.f32.mxu0 %vm2424_vm0, %v2425_v8  ;;  %2350 = vmatpush3.bf16.msra.mxu0 %v2349_v22 }
 0x124   :  { %2351 = vmatprep.subr.bf16.mxu0 %v2423_v0 }
 0x126   :  { %2008 = vmatmul.mubr.msk.f32.gmra.mrb[56].mxu0 %vm51_vm1, %v2573_v44 }
 0x127   :  { %2010 = vmatprep.mubr.msk.f32.mxu0 %vm2424_vm0, %v2425_v8  ;;  %2353 = vmatpush3.bf16.msra.mxu0 %v2352_v25 }
 0x128   :  { %2354 = vmatprep.subr.bf16.mxu0 %v2423_v0 }
 0x12a   :  { %2011 = vmatmul.mubr.msk.f32.gmra.mrb[58].mxu0 %vm51_vm1, %v2600_v51 }
 0x12b   :  { %2013 = vmatprep.mubr.msk.f32.mxu0 %vm2424_vm0, %v2425_v8  ;;  %2356 = vmatpush3.bf16.msra.mxu0 %v2355_v28 }
 0x12e   :  { %2014 = vmatmul.mubr.msk.f32.gmra.mrb[60].mxu0 %vm51_vm1, %v2627_v58 }
 0x12f   :  { %2016 = vmatprep.mubr.msk.f32.mxu0 %vm2424_vm0, %v2425_v8 }
 0x132   :  { %2017 = vmatmul.mubr.msk.f32.gmra.mrb[62].mxu0 %vm51_vm1, %v2654_v2 }
 0x133   :  { %2019 = vmatprep.mubr.msk.f32.mxu0 %vm2424_vm0, %v2425_v8 }
 0x136   :  { %2020 = vmatmul.mubr.msk.f32.gmra.mrb[64].mxu0 %vm51_vm1, %v2681_v10 }
 0x137   :  { %2022 = vmatprep.mubr.msk.f32.mxu0 %vm2424_vm0, %v2425_v8 }
 0x13a   :  { %2023 = vmatmul.mubr.msk.f32.gmra.mrb[66].mxu0 %vm51_vm1, %v2702_v15 }
 0x13b   :  { %2025 = vmatprep.mubr.msk.f32.mxu0 %vm2424_vm0, %v2425_v8 }
 0x13e   :  { %2026 = vmatmul.mubr.msk.f32.gmra.mrb[68].mxu0 %vm51_vm1, %v2717_v17 }
 0x13f   :  { %2028 = vmatprep.mubr.msk.f32.mxu0 %vm2424_vm0, %v2425_v8 }
 0x142   :  { %2029 = vmatmul.mubr.msk.f32.gmra.mrb[70].mxu0 %vm51_vm1, %v2731_v18 }
 0x143   :  { %2031 = vmatprep.mubr.msk.f32.mxu0 %vm2424_vm0, %v2425_v8 }
 0x146   :  { %2032 = vmatmul.mubr.msk.f32.gmra.mrb[72].mxu0 %vm51_vm1, %v2744_v19 }
 0x147   :  { %2034 = vmatprep.mubr.msk.f32.mxu0 %vm2424_vm0, %v2425_v8 }
 0x14a   :  { %2035 = vmatmul.mubr.msk.f32.gmra.mrb[74].mxu0 %vm51_vm1, %v2757_v20 }
 0x14b   :  { %2037 = vmatprep.mubr.msk.f32.mxu0 %vm2424_vm0, %v2425_v8 }
 0x14e   :  { %2038 = vmatmul.mubr.msk.f32.gmra.mrb[76].mxu0 %vm51_vm1, %v2770_v21 }
 0x14f   :  { %2127 = vmatprep.mubr.msk.f32.mxu0 %vm2424_vm0, %v2425_v8 }
 0x152   :  { %2128 = vmatmul.mubr.msk.f32.vlgmr.msra.gmra.mrb[78].mxu0 %vm51_vm1, %v2521_v30  ;;  %v677_v30 = vld [vmem:[%s3451_s2 + $0x140] sm:$0xff] }
 0x153   :  { %2130 = vmatprep.mubr.msk.f32.mxu0 %vm2424_vm0, %v2425_v8 }
 0x156   :  { %2131 = vmatmul.mubr.msk.f32.gmra.mrb[80].mxu0 %vm51_vm1, %v2546_v37  ;;  %v2334_v37 = vpack.c.bf16 %v678_v43, %v677_v30 }
 0x157   :  { %2133 = vmatprep.mubr.msk.f32.mxu0 %vm2424_vm0, %v2425_v8 }
 0x158   :  { %2335 = vmatpush3.bf16.msra.mxu1 %v2334_v37 }
 0x159   :  { %2336 = vmatprep.subr.bf16.mxu1 %v2423_v0 }
 0x15a   :  { %2134 = vmatmul.mubr.msk.f32.gmra.mrb[82].mxu0 %vm51_vm1, %v2573_v44  ;;  %v679_v44 = vld [vmem:[%s3451_s2 + $0x150] sm:$0xff] }
 0x15b   :  { %2136 = vmatprep.mubr.msk.f32.mxu0 %vm2424_vm0, %v2425_v8 }
 0x15e   :  { %2137 = vmatmul.mubr.msk.f32.gmra.mrb[84].mxu0 %vm51_vm1, %v2600_v51  ;;  %v2337_v51 = vpack.c.bf16 %v680_v45, %v679_v44 }
 0x15f   :  { %2139 = vmatprep.mubr.msk.f32.mxu0 %vm2424_vm0, %v2425_v8 }
 0x160   :  { %2338 = vmatpush3.bf16.msra.mxu1 %v2337_v51 }
 0x161   :  { %2339 = vmatprep.subr.bf16.mxu1 %v2423_v0 }
 0x162   :  { %2140 = vmatmul.mubr.msk.f32.gmra.mrb[86].mxu0 %vm51_vm1, %v2627_v58  ;;  %v681_v58 = vld [vmem:[%s3451_s2 + $0x160] sm:$0xff] }
 0x163   :  { %2142 = vmatprep.mubr.msk.f32.mxu0 %vm2424_vm0, %v2425_v8  ;;  %v2340_v47 = vpack.c.bf16 %v682_v46, %v681_v58 }
 0x165   :  { %2341 = vmatpush3.bf16.msra.mxu1 %v2340_v47 }
 0x166   :  { %2143 = vmatmul.mubr.msk.f32.gmra.mrb[88].mxu0 %vm51_vm1, %v2654_v2  ;;  %2342 = vmatprep.subr.bf16.mxu1 %v2423_v0  ;;  %v683_v2 = vld [vmem:[%s3451_s2 + $0x170] sm:$0xff] }
 0x167   :  { %2145 = vmatprep.mubr.msk.f32.mxu0 %vm2424_vm0, %v2425_v8 }
 0x16a   :  { %2146 = vmatmul.mubr.msk.f32.gmra.mrb[90].mxu0 %vm51_vm1, %v2681_v10  ;;  %v2343_v10 = vpack.c.bf16 %v684_v48, %v683_v2 }
 0x16b   :  { %2148 = vmatprep.mubr.msk.f32.mxu0 %vm2424_vm0, %v2425_v8 }
 0x16c   :  { %2344 = vmatpush3.bf16.msra.mxu1 %v2343_v10 }
 0x16d   :  { %2357 = vmatprep.subr.bf16.mxu1 %v2423_v0 }
 0x16e   :  { %2149 = vmatmul.mubr.msk.f32.gmra.mrb[92].mxu0 %vm51_vm1, %v2702_v15 }
 0x16f   :  { %2151 = vmatprep.mubr.msk.f32.mxu0 %vm2424_vm0, %v2425_v8 }
 0x172   :  { %2152 = vmatmul.mubr.msk.f32.gmra.mrb[94].mxu0 %vm51_vm1, %v2717_v17 }
 0x173   :  { %2154 = vmatprep.mubr.msk.f32.mxu0 %vm2424_vm0, %v2425_v8 }
 0x176   :  { %2155 = vmatmul.mubr.msk.f32.gmra.mrb[96].mxu0 %vm51_vm1, %v2731_v18 }
 0x177   :  { %2157 = vmatprep.mubr.msk.f32.mxu0 %vm2424_vm0, %v2425_v8 }
 0x17a   :  { %2158 = vmatmul.mubr.msk.f32.gmra.mrb[98].mxu0 %vm51_vm1, %v2744_v19 }
 0x17b   :  { %2160 = vmatprep.mubr.msk.f32.mxu0 %vm2424_vm0, %v2425_v8 }
 0x17e   :  { %2161 = vmatmul.mubr.msk.f32.gmra.mrb[100].mxu0 %vm51_vm1, %v2757_v20 }
 0x17f   :  { %2163 = vmatprep.mubr.msk.f32.mxu0 %vm2424_vm0, %v2425_v8 }
 0x182   :  { %2164 = vmatmul.mubr.msk.f32.gmra.mrb[102].mxu0 %vm51_vm1, %v2770_v21 }
 0x1bd   :  { %v597_v15 = vpop.f32.mrb[26].mxu1  ;;  %v467_v17 = vpop.f32.mrb[26].mxu0 }
 0x1be   :  { %v1948_v18 = vpop.f32.mrb[27].mxu1  ;;  %v3054_v49 = vadd.f32 %v597_v15, %v467_v17  ;;  %v1877_v50 = vpop.f32.mrb[27].mxu0 }
 0x1bf   :  { %v979_v50 = vld [vmem:[%s3451_s2 + $0x180] sm:$0xff] }
 0x1c1   :  { %v602_v52 = vpop.f32.mrb[28].mxu1  ;;  %v472_v19 = vpop.f32.mrb[28].mxu0 }
 0x1c2   :  { %v1951_v53 = vpop.f32.mrb[29].mxu1  ;;  %v3056_v54 = vadd.f32 %v602_v52, %v472_v19  ;;  %v1880_v55 = vpop.f32.mrb[29].mxu0  ;;  %v980_v52 = vld [vmem:[%s3451_s2 + $0x188] sm:$0xff] }
 0x1c3   :  { %v2358_v53 = vpack.c.bf16 %v980_v52, %v979_v50 }
 0x1c5   :  { %v607_v56 = vpop.f32.mrb[30].mxu1  ;;  %v477_v20 = vpop.f32.mrb[30].mxu0 }
 0x1c6   :  { %v1954_v57 = vpop.f32.mrb[31].mxu1  ;;  %v3058_v59 = vadd.f32 %v607_v56, %v477_v20  ;;  %v1883_v60 = vpop.f32.mrb[31].mxu0  ;;  %v981_v20 = vld [vmem:[%s3451_s2 + $0x190] sm:$0xff] }
 0x1c7   :  { %v982_v57 = vld [vmem:[%s3451_s2 + $0x198] sm:$0xff] }
 0x1c9   :  { %v612_v61 = vpop.f32.mrb[32].mxu1  ;;  %v482_v21 = vpop.f32.mrb[32].mxu0 }
 0x1ca   :  { %v1957_v62 = vpop.f32.mrb[33].mxu1  ;;  %v3060_v63 = vadd.f32 %v612_v61, %v482_v21  ;;  %v1886_v1 = vpop.f32.mrb[33].mxu0  ;;  %v2361_v61 = vpack.c.bf16 %v982_v57, %v981_v20 }
 0x1cb   :  { %v983_v1 = vld [vmem:[%s3451_s2 + $0x1a0] sm:$0xff] }
 0x1cd   :  { %v617_v3 = vpop.f32.mrb[34].mxu1  ;;  %v487_v4 = vpop.f32.mrb[34].mxu0 }
 0x1ce   :  { %v1960_v5 = vpop.f32.mrb[35].mxu1  ;;  %v3062_v6 = vadd.f32 %v617_v3, %v487_v4  ;;  %v1889_v7 = vpop.f32.mrb[35].mxu0  ;;  %v984_v3 = vld [vmem:[%s3451_s2 + $0x1a8] sm:$0xff] }
 0x1cf   :  { %v2364_v5 = vpack.c.bf16 %v984_v3, %v983_v1 }
 0x1d1   :  { %v622_v9 = vpop.f32.mrb[36].mxu1  ;;  %v492_v11 = vpop.f32.mrb[36].mxu0 }
 0x1d2   :  { %v1963_v12 = vpop.f32.mrb[37].mxu1  ;;  %v3064_v13 = vadd.f32 %v622_v9, %v492_v11  ;;  %v1892_v14 = vpop.f32.mrb[37].mxu0  ;;  %v985_v11 = vld [vmem:[%s3451_s2 + $0x1b0] sm:$0xff] }
 0x1d3   :  { %v986_v12 = vld [vmem:[%s3451_s2 + $0x1b8] sm:$0xff] }
 0x1d5   :  { %v627_v16 = vpop.f32.mrb[38].mxu1  ;;  %v497_v22 = vpop.f32.mrb[38].mxu0 }
 0x1d6   :  { %v1966_v23 = vpop.f32.mrb[39].mxu1  ;;  %v3066_v24 = vadd.f32 %v627_v16, %v497_v22  ;;  %v1895_v25 = vpop.f32.mrb[39].mxu0  ;;  %v2367_v16 = vpack.c.bf16 %v986_v12, %v985_v11 }
 0x1d7   :  { %v987_v25 = vld [vmem:[%s3451_s2 + $0x1c0] sm:$0xff] }
 0x1d9   :  { %v632_v26 = vpop.f32.mrb[40].mxu1  ;;  %v502_v27 = vpop.f32.mrb[40].mxu0 }
 0x1da   :  { %v1969_v28 = vpop.f32.mrb[41].mxu1  ;;  %v3068_v29 = vadd.f32 %v632_v26, %v502_v27  ;;  %v1898_v31 = vpop.f32.mrb[41].mxu0  ;;  %v988_v26 = vld [vmem:[%s3451_s2 + $0x1c8] sm:$0xff] }
 0x1db   :  { %v2370_v28 = vpack.c.bf16 %v988_v26, %v987_v25 }
 0x1dd   :  { %v637_v32 = vpop.f32.mrb[42].mxu1  ;;  %v507_v33 = vpop.f32.mrb[42].mxu0 }
 0x1de   :  { %v1972_v34 = vpop.f32.mrb[43].mxu1  ;;  %v3070_v35 = vadd.f32 %v637_v32, %v507_v33  ;;  %v1901_v36 = vpop.f32.mrb[43].mxu0  ;;  %v989_v33 = vld [vmem:[%s3451_s2 + $0x1d0] sm:$0xff] }
 0x1df   :  { %v990_v34 = vld [vmem:[%s3451_s2 + $0x1d8] sm:$0xff] }
 0x1e1   :  { %v642_v38 = vpop.f32.mrb[44].mxu1  ;;  %v512_v39 = vpop.f32.mrb[44].mxu0 }
 0x1e2   :  { %v1975_v40 = vpop.f32.mrb[45].mxu1  ;;  %v3072_v41 = vadd.f32 %v642_v38, %v512_v39  ;;  %v1904_v42 = vpop.f32.mrb[45].mxu0  ;;  %v2373_v38 = vpack.c.bf16 %v990_v34, %v989_v33 }
 0x1e3   :  { %v991_v42 = vld [vmem:[%s3451_s2 + $0x1e0] sm:$0xff] }
 0x1e5   :  { %v647_v30 = vpop.f32.mrb[46].mxu1  ;;  %v517_v43 = vpop.f32.mrb[46].mxu0 }
 0x1e6   :  { %v1978_v37 = vpop.f32.mrb[47].mxu1  ;;  %v3074_v44 = vadd.f32 %v647_v30, %v517_v43  ;;  %v1907_v45 = vpop.f32.mrb[47].mxu0  ;;  %v992_v30 = vld [vmem:[%s3451_s2 + $0x1e8] sm:$0xff] }
 0x1e7   :  { %v2376_v37 = vpack.c.bf16 %v992_v30, %v991_v42 }
 0x1e9   :  { %v652_v51 = vpop.f32.mrb[48].mxu1  ;;  %v522_v58 = vpop.f32.mrb[48].mxu0 }
 0x1ea   :  { %v1981_v46 = vpop.f32.mrb[49].mxu1  ;;  %v3076_v47 = vadd.f32 %v652_v51, %v522_v58  ;;  %v1910_v2 = vpop.f32.mrb[49].mxu0  ;;  %v993_v58 = vld [vmem:[%s3451_s2 + $0x1f0] sm:$0xff] }
 0x1eb   :  { %v994_v46 = vld [vmem:[%s3451_s2 + $0x1f8] sm:$0xff] }
 0x1ed   :  { %v657_v48 = vpop.f32.mrb[50].mxu1  ;;  %v527_v10 = vpop.f32.mrb[50].mxu0 }
 0x1ee   :  { %v1984_v15 = vpop.f32.mrb[51].mxu1  ;;  %v3078_v17 = vadd.f32 %v657_v48, %v527_v10  ;;  %v1913_v18 = vpop.f32.mrb[51].mxu0  ;;  %v2379_v48 = vpack.c.bf16 %v994_v46, %v993_v58 }
 0x1f1   :  { %v751_v19 = vpop.f32.mrb[52].mxu0 }
 0x1f2   :  { %v815_v55 = vmax.f32 %v751_v19, 0.0  ;;  %v2003_v56 = vpop.f32.mrb[53].mxu0 }
 0x1f4   :  { %2073 = vmatmul.mubr.f32.vlgmr.msra.gmra.mrb[52].mxu1 %v815_v55 }
 0x1f5   :  { %2359 = vmatpush3.bf16.msra.mxu1 %v2358_v53  ;;  %v756_v60 = vpop.f32.mrb[54].mxu0  ;;  %2075 = vmatprep.mubr.msk.f32.mxu1 %vm2424_vm0, %v2425_v8 }
 0x1f6   :  { %v816_v21 = vmax.f32 %v756_v60, 0.0  ;;  %v2006_v62 = vpop.f32.mrb[55].mxu0  ;;  %2360 = vmatprep.subr.bf16.mxu1 %v2423_v0 }
 0x1f8   :  { %2076 = vmatmul.mubr.f32.gmra.mrb[54].mxu1 %v816_v21 }
 0x1f9   :  { %v761_v4 = vpop.f32.mrb[56].mxu0  ;;  %2078 = vmatprep.mubr.msk.f32.mxu1 %vm2424_vm0, %v2425_v8  ;;  %2362 = vmatpush3.bf16.msra.mxu1 %v2361_v61 }
 0x1fa   :  { %v817_v7 = vmax.f32 %v761_v4, 0.0  ;;  %v2009_v9 = vpop.f32.mrb[57].mxu0  ;;  %2363 = vmatprep.subr.bf16.mxu1 %v2423_v0 }
 0x1fc   :  { %2079 = vmatmul.mubr.f32.gmra.mrb[56].mxu1 %v817_v7 }
 0x1fd   :  { %v766_v14 = vpop.f32.mrb[58].mxu0  ;;  %2081 = vmatprep.mubr.msk.f32.mxu1 %vm2424_vm0, %v2425_v8  ;;  %2365 = vmatpush3.bf16.msra.mxu1 %v2364_v5 }
 0x1fe   :  { %v818_v22 = vmax.f32 %v766_v14, 0.0  ;;  %v2012_v23 = vpop.f32.mrb[59].mxu0  ;;  %2366 = vmatprep.subr.bf16.mxu1 %v2423_v0 }
 0x200   :  { %2082 = vmatmul.mubr.f32.gmra.mrb[58].mxu1 %v818_v22 }
 0x201   :  { %v771_v27 = vpop.f32.mrb[60].mxu0  ;;  %2084 = vmatprep.mubr.msk.f32.mxu1 %vm2424_vm0, %v2425_v8  ;;  %2368 = vmatpush3.bf16.msra.mxu1 %v2367_v16 }
 0x202   :  { %v819_v31 = vmax.f32 %v771_v27, 0.0  ;;  %v2015_v32 = vpop.f32.mrb[61].mxu0  ;;  %2369 = vmatprep.subr.bf16.mxu1 %v2423_v0 }
 0x204   :  { %2085 = vmatmul.mubr.f32.gmra.mrb[60].mxu1 %v819_v31 }
 0x205   :  { %v776_v36 = vpop.f32.mrb[62].mxu0  ;;  %2087 = vmatprep.mubr.msk.f32.mxu1 %vm2424_vm0, %v2425_v8  ;;  %2371 = vmatpush3.bf16.msra.mxu1 %v2370_v28 }
 0x206   :  { %v820_v39 = vmax.f32 %v776_v36, 0.0  ;;  %v2018_v40 = vpop.f32.mrb[63].mxu0  ;;  %2372 = vmatprep.subr.bf16.mxu1 %v2423_v0 }
 0x208   :  { %2088 = vmatmul.mubr.f32.gmra.mrb[62].mxu1 %v820_v39 }
 0x209   :  { %v781_v43 = vpop.f32.mrb[64].mxu0  ;;  %2090 = vmatprep.mubr.msk.f32.mxu1 %vm2424_vm0, %v2425_v8  ;;  %2374 = vmatpush3.bf16.msra.mxu1 %v2373_v38 }
 0x20a   :  { %v821_v45 = vmax.f32 %v781_v43, 0.0  ;;  %v2021_v51 = vpop.f32.mrb[65].mxu0  ;;  %2375 = vmatprep.subr.bf16.mxu1 %v2423_v0 }
 0x20c   :  { %2091 = vmatmul.mubr.f32.gmra.mrb[64].mxu1 %v821_v45 }
 0x20d   :  { %v786_v2 = vpop.f32.mrb[66].mxu0  ;;  %2093 = vmatprep.mubr.msk.f32.mxu1 %vm2424_vm0, %v2425_v8  ;;  %2377 = vmatpush3.bf16.msra.mxu1 %v2376_v37 }
 0x20e   :  { %v822_v10 = vmax.f32 %v786_v2, 0.0  ;;  %v2024_v15 = vpop.f32.mrb[67].mxu0  ;;  %2378 = vmatprep.subr.bf16.mxu1 %v2423_v0 }
 0x210   :  { %2094 = vmatmul.mubr.f32.gmra.mrb[66].mxu1 %v822_v10 }
 0x211   :  { %v791_v18 = vpop.f32.mrb[68].mxu0  ;;  %2096 = vmatprep.mubr.msk.f32.mxu1 %vm2424_vm0, %v2425_v8  ;;  %2380 = vmatpush3.bf16.msra.mxu1 %v2379_v48 }
 0x212   :  { %v823_v50 = vmax.f32 %v791_v18, 0.0  ;;  %v2027_v52 = vpop.f32.mrb[69].mxu0 }
 0x214   :  { %2097 = vmatmul.mubr.f32.gmra.mrb[68].mxu1 %v823_v50 }
 0x215   :  { %v796_v19 = vpop.f32.mrb[70].mxu0  ;;  %2099 = vmatprep.mubr.msk.f32.mxu1 %vm2424_vm0, %v2425_v8 }
 0x216   :  { %v824_v53 = vmax.f32 %v796_v19, 0.0  ;;  %v2030_v55 = vpop.f32.mrb[71].mxu0 }
 0x218   :  { %2100 = vmatmul.mubr.f32.gmra.mrb[70].mxu1 %v824_v53 }
 0x219   :  { %v801_v56 = vpop.f32.mrb[72].mxu0  ;;  %2102 = vmatprep.mubr.msk.f32.mxu1 %vm2424_vm0, %v2425_v8 }
 0x21a   :  { %v825_v0 = vmax.f32 %v801_v56, 0.0  ;;  %v2033_v20 = vpop.f32.mrb[73].mxu0 }
 0x21c   :  { %2103 = vmatmul.mubr.f32.gmra.mrb[72].mxu1 %v825_v0 }
 0x21d   :  { %v806_v57 = vpop.f32.mrb[74].mxu0  ;;  %2105 = vmatprep.mubr.msk.f32.mxu1 %vm2424_vm0, %v2425_v8 }
 0x21e   :  { %v826_v60 = vmax.f32 %v806_v57, 0.0  ;;  %v2036_v61 = vpop.f32.mrb[75].mxu0 }
 0x220   :  { %2106 = vmatmul.mubr.f32.gmra.mrb[74].mxu1 %v826_v60 }
 0x221   :  { %v811_v21 = vpop.f32.mrb[76].mxu0  ;;  %2108 = vmatprep.mubr.msk.f32.mxu1 %vm2424_vm0, %v2425_v8 }
 0x222   :  { %v827_v62 = vmax.f32 %v811_v21, 0.0  ;;  %v2039_v1 = vpop.f32.mrb[77].mxu0 }
 0x224   :  { %2109 = vmatmul.mubr.f32.gmra.mrb[76].mxu1 %v827_v62 }
 0x225   :  { %v1061_v3 = vpop.f32.mrb[78].mxu0  ;;  %2198 = vmatprep.mubr.msk.f32.mxu1 %vm2424_vm0, %v2425_v8 }
 0x226   :  { %v1125_v4 = vmax.f32 %v1061_v3, 0.0  ;;  %v2129_v5 = vpop.f32.mrb[79].mxu0 }
 0x228   :  { %2199 = vmatmul.mubr.f32.vlgmr.msra.gmra.mrb[78].mxu1 %v1125_v4 }
 0x229   :  { %v1066_v7 = vpop.f32.mrb[80].mxu0  ;;  %2201 = vmatprep.mubr.msk.f32.mxu1 %vm2424_vm0, %v2425_v8 }
 0x22a   :  { %v1126_v9 = vmax.f32 %v1066_v7, 0.0  ;;  %v2132_v11 = vpop.f32.mrb[81].mxu0 }
 0x22c   :  { %2202 = vmatmul.mubr.f32.gmra.mrb[80].mxu1 %v1126_v9 }
 0x22d   :  { %v1071_v12 = vpop.f32.mrb[82].mxu0  ;;  %2204 = vmatprep.mubr.msk.f32.mxu1 %vm2424_vm0, %v2425_v8 }
 0x22e   :  { %v1127_v14 = vmax.f32 %v1071_v12, 0.0  ;;  %v2135_v16 = vpop.f32.mrb[83].mxu0 }
 0x230   :  { %2205 = vmatmul.mubr.f32.gmra.mrb[82].mxu1 %v1127_v14 }
 0x231   :  { %v1076_v22 = vpop.f32.mrb[84].mxu0  ;;  %2207 = vmatprep.mubr.msk.f32.mxu1 %vm2424_vm0, %v2425_v8 }
 0x232   :  { %v1128_v23 = vmax.f32 %v1076_v22, 0.0  ;;  %v2138_v25 = vpop.f32.mrb[85].mxu0 }
 0x234   :  { %2208 = vmatmul.mubr.f32.gmra.mrb[84].mxu1 %v1128_v23 }
 0x235   :  { %v1081_v26 = vpop.f32.mrb[86].mxu0  ;;  %2210 = vmatprep.mubr.msk.f32.mxu1 %vm2424_vm0, %v2425_v8 }
 0x236   :  { %v1129_v27 = vmax.f32 %v1081_v26, 0.0  ;;  %v2141_v28 = vpop.f32.mrb[87].mxu0 }
 0x238   :  { %2211 = vmatmul.mubr.f32.gmra.mrb[86].mxu1 %v1129_v27 }
 0x239   :  { %v1086_v31 = vpop.f32.mrb[88].mxu0  ;;  %2213 = vmatprep.mubr.msk.f32.mxu1 %vm2424_vm0, %v2425_v8 }
 0x23a   :  { %v1130_v32 = vmax.f32 %v1086_v31, 0.0  ;;  %v2144_v33 = vpop.f32.mrb[89].mxu0 }
 0x23c   :  { %2214 = vmatmul.mubr.f32.gmra.mrb[88].mxu1 %v1130_v32 }
 0x23d   :  { %v1091_v34 = vpop.f32.mrb[90].mxu0  ;;  %2216 = vmatprep.mubr.msk.f32.mxu1 %vm2424_vm0, %v2425_v8 }
 0x23e   :  { %v1131_v36 = vmax.f32 %v1091_v34, 0.0  ;;  %v2147_v38 = vpop.f32.mrb[91].mxu0 }
 0x23f   :  { %v2410_v38 = vld [vmem:[%s3452_s0] sm:$0xff] }
 0x240   :  { %2217 = vmatmul.mubr.f32.gmra.mrb[90].mxu1 %v1131_v36 }
 0x241   :  { %v1096_v39 = vpop.f32.mrb[92].mxu0  ;;  %2219 = vmatprep.mubr.msk.f32.mxu1 %vm2424_vm0, %v2425_v8 }
 0x242   :  { %v1132_v40 = vmax.f32 %v1096_v39, 0.0  ;;  %v2150_v42 = vpop.f32.mrb[93].mxu0 }
 0x244   :  { %2220 = vmatmul.mubr.f32.gmra.mrb[92].mxu1 %v1132_v40 }
 0x245   :  { %v1101_v30 = vpop.f32.mrb[94].mxu0  ;;  %2222 = vmatprep.mubr.msk.f32.mxu1 %vm2424_vm0, %v2425_v8 }
 0x246   :  { %v1133_v43 = vmax.f32 %v1101_v30, 0.0  ;;  %v2153_v37 = vpop.f32.mrb[95].mxu0 }
 0x248   :  { %2223 = vmatmul.mubr.f32.gmra.mrb[94].mxu1 %v1133_v43 }
 0x249   :  { %v1106_v45 = vpop.f32.mrb[96].mxu0  ;;  %2225 = vmatprep.mubr.msk.f32.mxu1 %vm2424_vm0, %v2425_v8 }
 0x24a   :  { %v1134_v51 = vmax.f32 %v1106_v45, 0.0  ;;  %v2156_v58 = vpop.f32.mrb[97].mxu0 }
 0x24b   :  { %v2412_v58 = vld [vmem:[%s3452_s0 + $0x10] sm:$0xff] }
 0x24c   :  { %2226 = vmatmul.mubr.f32.gmra.mrb[96].mxu1 %v1134_v51 }
 0x24d   :  { %v1111_v46 = vpop.f32.mrb[98].mxu0  ;;  %2228 = vmatprep.mubr.msk.f32.mxu1 %vm2424_vm0, %v2425_v8 }
 0x24e   :  { %v1135_v2 = vmax.f32 %v1111_v46, 0.0  ;;  %v2159_v48 = vpop.f32.mrb[99].mxu0 }
 0x250   :  { %2229 = vmatmul.mubr.f32.gmra.mrb[98].mxu1 %v1135_v2 }
 0x251   :  { %v1116_v10 = vpop.f32.mrb[100].mxu0  ;;  %2231 = vmatprep.mubr.msk.f32.mxu1 %vm2424_vm0, %v2425_v8 }
 0x252   :  { %v1136_v15 = vmax.f32 %v1116_v10, 0.0  ;;  %v2162_v18 = vpop.f32.mrb[101].mxu0 }
 0x253   :  { %v2413_v18 = vld [vmem:[%s3452_s0 + $0x18] sm:$0xff] }
 0x254   :  { %2232 = vmatmul.mubr.f32.gmra.mrb[100].mxu1 %v1136_v15 }
 0x255   :  { %v1121_v50 = vpop.f32.mrb[102].mxu0  ;;  %2234 = vmatprep.mubr.msk.f32.mxu1 %vm2424_vm0, %v2425_v8 }
 0x256   :  { %v1137_v52 = vmax.f32 %v1121_v50, 0.0  ;;  %v2165_v19 = vpop.f32.mrb[103].mxu0 }
 0x258   :  { %2235 = vmatmul.mubr.f32.gmra.mrb[102].mxu1 %v1137_v52 }
 0x2c7   :  { %v894_v53 = vpop.f32.mrb[52].mxu1 }
 0x2c8   :  { %v958_v55 = vadd.f32 %v894_v53, %v3054_v49  ;;  %v2074_v56 = vpop.f32.mrb[53].mxu1 }
 0x2c9   :  { %v2414_v56 = vld [vmem:[%s3452_s0 + $0x20] sm:$0xff] }
 0x2cb   :  { %v899_v0 = vpop.f32.mrb[54].mxu1 }
 0x2cc   :  { %v959_v20 = vadd.f32 %v899_v0, %v3056_v54  ;;  %v2077_v57 = vpop.f32.mrb[55].mxu1 }
 0x2cf   :  { %v904_v60 = vpop.f32.mrb[56].mxu1 }
 0x2d0   :  { %v960_v61 = vadd.f32 %v904_v60, %v3058_v59  ;;  %v2080_v21 = vpop.f32.mrb[57].mxu1 }
 0x2d1   :  { %v2415_v21 = vld [vmem:[%s3452_s0 + $0x28] sm:$0xff] }
 0x2d3   :  { %v909_v62 = vpop.f32.mrb[58].mxu1 }
 0x2d4   :  { %v961_v1 = vadd.f32 %v909_v62, %v3060_v63  ;;  %v2083_v3 = vpop.f32.mrb[59].mxu1 }
 0x2d7   :  { %v914_v8 = vpop.f32.mrb[60].mxu1 }
 0x2d8   :  { %v962_v4 = vadd.f32 %v914_v8, %v3062_v6  ;;  %v2086_v5 = vpop.f32.mrb[61].mxu1 }
 0x2d9   :  { %v2416_v5 = vld [vmem:[%s3452_s0 + $0x30] sm:$0xff] }
 0x2db   :  { %v919_v7 = vpop.f32.mrb[62].mxu1 }
 0x2dc   :  { %v963_v49 = vadd.f32 %v919_v7, %v3064_v13  ;;  %v2089_v9 = vpop.f32.mrb[63].mxu1 }
 0x2df   :  { %v924_v11 = vpop.f32.mrb[64].mxu1 }
 0x2e0   :  { %v964_v54 = vadd.f32 %v924_v11, %v3066_v24  ;;  %v2092_v12 = vpop.f32.mrb[65].mxu1 }
 0x2e3   :  { %v929_v14 = vpop.f32.mrb[66].mxu1 }
 0x2e4   :  { %v3193_v59 = vadd.f32 %v929_v14, %v3068_v29  ;;  %v2095_v16 = vpop.f32.mrb[67].mxu1 }
 0x2e7   :  { %v934_v22 = vpop.f32.mrb[68].mxu1 }
 0x2e8   :  { %v3196_v63 = vadd.f32 %v934_v22, %v3070_v35  ;;  %v2098_v23 = vpop.f32.mrb[69].mxu1 }
 0x2eb   :  { %v939_v6 = vpop.f32.mrb[70].mxu1 }
 0x2ec   :  { %v3199_v25 = vadd.f32 %v939_v6, %v3072_v41  ;;  %v2101_v13 = vpop.f32.mrb[71].mxu1 }
 0x2ef   :  { %v944_v26 = vpop.f32.mrb[72].mxu1 }
 0x2f0   :  { %v3202_v27 = vadd.f32 %v944_v26, %v3074_v44  ;;  %v2104_v24 = vpop.f32.mrb[73].mxu1 }
 0x2f3   :  { %v949_v28 = vpop.f32.mrb[74].mxu1 }
 0x2f4   :  { %v3205_v29 = vadd.f32 %v949_v28, %v3076_v47  ;;  %v2107_v31 = vpop.f32.mrb[75].mxu1 }
 0x2f7   :  { %v954_v32 = vpop.f32.mrb[76].mxu1 }
 0x2f8   :  { %v3208_v35 = vadd.f32 %v954_v32, %v3078_v17  ;;  %v2110_v33 = vpop.f32.mrb[77].mxu1  ;;  %v2411_v17 = vld [vmem:[%s3452_s0 + $0x8] sm:$0xff] }
 0x2fb   :  { %v1204_v34 = vpop.f32.mrb[78].mxu1 }
 0x2fc   :  { %v1268_v36 = vadd.f32 %v1204_v34, %v958_v55  ;;  %v2200_v41 = vpop.f32.mrb[79].mxu1 }
 0x2fe   :  { %v3213_v44 = vadd.f32 %v2410_v38, %v1268_v36 }
 0x2ff   :  { %v1209_v39 = vpop.f32.mrb[80].mxu1 }
 0x300   :  { %v1269_v40 = vadd.f32 %v1209_v39, %v959_v20  ;;  %v2203_v42 = vpop.f32.mrb[81].mxu1  ;;  %v1294_v47 = vsel %vm51_vm1, %v3213_v44, 0.0 }
 0x301   :  { %1295 = vadd.xlane.f32.xlu0 %v1294_v47 }
 0x302   :  { %v3220_v30 = vadd.f32 %v2411_v17, %v1269_v40 }
 0x303   :  { %v1214_v43 = vpop.f32.mrb[82].mxu1 }
 0x304   :  { %v1270_v37 = vadd.f32 %v1214_v43, %v960_v61  ;;  %v2206_v45 = vpop.f32.mrb[83].mxu1  ;;  %v1297_v51 = vsel %vm51_vm1, %v3220_v30, 0.0 }
 0x305   :  { %1298 = vadd.xlane.f32.xlu0 %v1297_v51 }
 0x306   :  { %v3227_v46 = vadd.f32 %v2412_v58, %v1270_v37 }
 0x307   :  { %v1219_v2 = vpop.f32.mrb[84].mxu1 }
 0x308   :  { %v1271_v48 = vadd.f32 %v1219_v2, %v961_v1  ;;  %v2209_v10 = vpop.f32.mrb[85].mxu1  ;;  %v1300_v15 = vsel %vm51_vm1, %v3227_v46, 0.0 }
 0x309   :  { %1301 = vadd.xlane.f32.xlu1 %v1300_v15 }
 0x30a   :  { %v3234_v50 = vadd.f32 %v2413_v18, %v1271_v48 }
 0x30b   :  { %v1224_v52 = vpop.f32.mrb[86].mxu1 }
 0x30c   :  { %v1272_v19 = vadd.f32 %v1224_v52, %v962_v4  ;;  %v2212_v53 = vpop.f32.mrb[87].mxu1  ;;  %v1303_v55 = vsel %vm51_vm1, %v3234_v50, 0.0 }
 0x30d   :  { %1304 = vadd.xlane.f32.xlu1 %v1303_v55 }
 0x30e   :  { %v3241_v0 = vadd.f32 %v2414_v56, %v1272_v19 }
 0x30f   :  { %v1229_v20 = vpop.f32.mrb[88].mxu1 }
 0x310   :  { %v1273_v57 = vadd.f32 %v1229_v20, %v963_v49  ;;  %v2215_v60 = vpop.f32.mrb[89].mxu1  ;;  %v1306_v61 = vsel %vm51_vm1, %v3241_v0, 0.0 }
 0x311   :  { %1307 = vadd.xlane.f32.xlu0 %v1306_v61 }
 0x312   :  { %v3248_v62 = vadd.f32 %v2415_v21, %v1273_v57 }
 0x313   :  { %v1234_v1 = vpop.f32.mrb[90].mxu1 }
 0x314   :  { %v1274_v3 = vadd.f32 %v1234_v1, %v964_v54  ;;  %v2218_v8 = vpop.f32.mrb[91].mxu1  ;;  %v1309_v4 = vsel %vm51_vm1, %v3248_v62, 0.0  ;;  %v2417_v54 = vld [vmem:[%s3452_s0 + $0x38] sm:$0xff] }
 0x315   :  { %1310 = vadd.xlane.f32.xlu1 %v1309_v4 }
 0x316   :  { %v3255_v7 = vadd.f32 %v2416_v5, %v1274_v3 }
 0x317   :  { %v1239_v49 = vpop.f32.mrb[92].mxu1 }
 0x318   :  { %v1275_v9 = vadd.f32 %v1239_v49, %v3193_v59  ;;  %v2221_v11 = vpop.f32.mrb[93].mxu1  ;;  %v1312_v12 = vsel %vm51_vm1, %v3255_v7, 0.0  ;;  %v2418_v59 = vld [vmem:[%s3452_s0 + $0x40] sm:$0xff] }
 0x319   :  { %1313 = vadd.xlane.f32.xlu0 %v1312_v12 }
 0x31a   :  { %v3263_v14 = vadd.f32 %v2417_v54, %v1275_v9 }
 0x31b   :  { %v1244_v16 = vpop.f32.mrb[94].mxu1 }
 0x31c   :  { %v1276_v22 = vadd.f32 %v1244_v16, %v3196_v63  ;;  %v2224_v23 = vpop.f32.mrb[95].mxu1  ;;  %v1315_v6 = vsel %vm51_vm1, %v3263_v14, 0.0  ;;  %v2419_v63 = vld [vmem:[%s3452_s0 + $0x48] sm:$0xff] }
 0x31d   :  { %1316 = vadd.xlane.f32.xlu1 %v1315_v6 }
 0x31e   :  { %v3271_v13 = vadd.f32 %v2418_v59, %v1276_v22 }
 0x31f   :  { %v1249_v26 = vpop.f32.mrb[96].mxu1 }
 0x320   :  { %v1277_v24 = vadd.f32 %v1249_v26, %v3199_v25  ;;  %v2227_v28 = vpop.f32.mrb[97].mxu1  ;;  %v1318_v31 = vsel %vm51_vm1, %v3271_v13, 0.0  ;;  %v2420_v25 = vld [vmem:[%s3452_s0 + $0x50] sm:$0xff] }
 0x321   :  { %1319 = vadd.xlane.f32.xlu0 %v1318_v31 }
 0x322   :  { %v3279_v32 = vadd.f32 %v2419_v63, %v1277_v24 }
 0x323   :  { %v1254_v33 = vpop.f32.mrb[98].mxu1 }
 0x324   :  { %v1278_v34 = vadd.f32 %v1254_v33, %v3202_v27  ;;  %v2230_v36 = vpop.f32.mrb[99].mxu1  ;;  %v1321_v41 = vsel %vm51_vm1, %v3279_v32, 0.0  ;;  %v2421_v27 = vld [vmem:[%s3452_s0 + $0x58] sm:$0xff] }
 0x325   :  { %1322 = vadd.xlane.f32.xlu1 %v1321_v41 }
 0x326   :  { %v3287_v38 = vadd.f32 %v2420_v25, %v1278_v34 }
 0x327   :  { %v1259_v39 = vpop.f32.mrb[100].mxu1 }
 0x328   :  { %v1279_v40 = vadd.f32 %v1259_v39, %v3205_v29  ;;  %v2233_v42 = vpop.f32.mrb[101].mxu1  ;;  %v1324_v47 = vsel %vm51_vm1, %v3287_v38, 0.0  ;;  %v2422_v29 = vld [vmem:[%s3452_s0 + $0x60] sm:$0xff] }
 0x329   :  { %1325 = vadd.xlane.f32.xlu0 %v1324_v47 }
 0x32a   :  { %v3295_v17 = vadd.f32 %v2421_v27, %v1279_v40 }
 0x32b   :  { %v1264_v43 = vpop.f32.mrb[102].mxu1 }
 0x32c   :  { %v1280_v37 = vadd.f32 %v1264_v43, %v3208_v35  ;;  %v2236_v45 = vpop.f32.mrb[103].mxu1  ;;  %v1327_v51 = vsel %vm51_vm1, %v3295_v17, 0.0 }
 0x32d   :  { %1328 = vadd.xlane.f32.xlu1 %v1327_v51 }
 0x32e   :  { %v3303_v58 = vadd.f32 %v2422_v29, %v1280_v37 }
 0x330   :  { %v1330_v2 = vsel %vm51_vm1, %v3303_v58, 0.0 }
 0x331   :  { %1331 = vadd.xlane.f32.xlu0 %v1330_v2 }
 0x38e   :  { %v1296_v48 = vpop.xlane.xlu0 %1295 }
 0x38f   :  { %v1334_v10 = vmul.f32 0.015625, %v1296_v48 }
 0x391   :  { %v3308_v15 = vsub.f32 %v3213_v44, %v1334_v10 }
 0x392   :  { %v1299_v35 = vpop.xlane.xlu0 %1298 }
 0x393   :  { %v1335_v18 = vmul.f32 0.015625, %v1299_v35  ;;  %v1360_v52 = vmul.f32 %v3308_v15, %v3308_v15 }
 0x395   :  { %v3313_v19 = vsub.f32 %v3220_v30, %v1335_v18  ;;  %v1373_v53 = vsel %vm51_vm1, %v1360_v52, 0.0 }
 0x396   :  { %v1302_v55 = vpop.xlane.xlu1 %1301  ;;  %1374 = vadd.xlane.f32.xlu1 %v1373_v53 }
 0x397   :  { %v1336_v56 = vmul.f32 0.015625, %v1302_v55  ;;  %v1361_v20 = vmul.f32 %v3313_v19, %v3313_v19 }
 0x399   :  { %v3319_v57 = vsub.f32 %v3227_v46, %v1336_v56  ;;  %v1376_v44 = vsel %vm51_vm1, %v1361_v20, 0.0 }
 0x39a   :  { %v1305_v60 = vpop.xlane.xlu1 %1304  ;;  %1377 = vadd.xlane.f32.xlu0 %v1376_v44 }
 0x39b   :  { %v1337_v61 = vmul.f32 0.015625, %v1305_v60  ;;  %v1362_v30 = vmul.f32 %v3319_v57, %v3319_v57 }
 0x39d   :  { %v3325_v21 = vsub.f32 %v3234_v50, %v1337_v61  ;;  %v1379_v1 = vsel %vm51_vm1, %v1362_v30, 0.0 }
 0x39e   :  { %v1308_v3 = vpop.xlane.xlu0 %1307  ;;  %1380 = vadd.xlane.f32.xlu1 %v1379_v1 }
 0x39f   :  { %v1338_v8 = vmul.f32 0.015625, %v1308_v3  ;;  %v1363_v46 = vmul.f32 %v3325_v21, %v3325_v21 }
 0x3a1   :  { %v3331_v4 = vsub.f32 %v3241_v0, %v1338_v8  ;;  %v1382_v5 = vsel %vm51_vm1, %v1363_v46, 0.0 }
 0x3a2   :  { %v1311_v49 = vpop.xlane.xlu1 %1310  ;;  %1383 = vadd.xlane.f32.xlu0 %v1382_v5 }
 0x3a3   :  { %v1339_v9 = vmul.f32 0.015625, %v1311_v49  ;;  %v1364_v50 = vmul.f32 %v3331_v4, %v3331_v4 }
 0x3a5   :  { %v3337_v11 = vsub.f32 %v3248_v62, %v1339_v9  ;;  %v1385_v12 = vsel %vm51_vm1, %v1364_v50, 0.0 }
 0x3a6   :  { %v1314_v54 = vpop.xlane.xlu0 %1313  ;;  %1386 = vadd.xlane.f32.xlu1 %v1385_v12 }
 0x3a7   :  { %v1340_v16 = vmul.f32 0.015625, %v1314_v54  ;;  %v1365_v0 = vmul.f32 %v3337_v11, %v3337_v11 }
 0x3a9   :  { %v3343_v22 = vsub.f32 %v3255_v7, %v1340_v16  ;;  %v1388_v23 = vsel %vm51_vm1, %v1365_v0, 0.0 }
 0x3aa   :  { %v1317_v6 = vpop.xlane.xlu1 %1316  ;;  %1389 = vadd.xlane.f32.xlu0 %v1388_v23 }
 0x3ab   :  { %v1341_v59 = vmul.f32 0.015625, %v1317_v6  ;;  %v1366_v62 = vmul.f32 %v3343_v22, %v3343_v22 }
 0x3ad   :  { %v3349_v26 = vsub.f32 %v3263_v14, %v1341_v59  ;;  %v1391_v24 = vsel %vm51_vm1, %v1366_v62, 0.0 }
 0x3ae   :  { %v1320_v28 = vpop.xlane.xlu0 %1319  ;;  %1392 = vadd.xlane.f32.xlu1 %v1391_v24 }
 0x3af   :  { %v1342_v31 = vmul.f32 0.015625, %v1320_v28  ;;  %v1367_v7 = vmul.f32 %v3349_v26, %v3349_v26 }
 0x3b1   :  { %v3355_v63 = vsub.f32 %v3271_v13, %v1342_v31  ;;  %v1394_v33 = vsel %vm51_vm1, %v1367_v7, 0.0 }
 0x3b2   :  { %v1323_v34 = vpop.xlane.xlu1 %1322  ;;  %1395 = vadd.xlane.f32.xlu0 %v1394_v33 }
 0x3b3   :  { %v1343_v36 = vmul.f32 0.015625, %v1323_v34  ;;  %v1368_v14 = vmul.f32 %v3355_v63, %v3355_v63 }
 0x3b5   :  { %v3361_v41 = vsub.f32 %v3279_v32, %v1343_v36  ;;  %v1397_v25 = vsel %vm51_vm1, %v1368_v14, 0.0 }
 0x3b6   :  { %v1326_v39 = vpop.xlane.xlu0 %1325  ;;  %1398 = vadd.xlane.f32.xlu1 %v1397_v25 }
 0x3b7   :  { %v1344_v40 = vmul.f32 0.015625, %v1326_v39  ;;  %v1369_v13 = vmul.f32 %v3361_v41, %v3361_v41 }
 0x3b9   :  { %v3367_v42 = vsub.f32 %v3287_v38, %v1344_v40  ;;  %v1400_v47 = vsel %vm51_vm1, %v1369_v13, 0.0 }
 0x3ba   :  { %v1329_v27 = vpop.xlane.xlu1 %1328  ;;  %1401 = vadd.xlane.f32.xlu0 %v1400_v47 }
 0x3bb   :  { %v1345_v43 = vmul.f32 0.015625, %v1329_v27  ;;  %v1370_v32 = vmul.f32 %v3367_v42, %v3367_v42 }
 0x3bd   :  { %v3373_v37 = vsub.f32 %v3295_v17, %v1345_v43  ;;  %v1403_v45 = vsel %vm51_vm1, %v1370_v32, 0.0 }
 0x3be   :  { %1404 = vadd.xlane.f32.xlu1 %v1403_v45  ;;  %v1332_v51 = vpop.xlane.xlu0 %1331 }
 0x3bf   :  { %v1346_v29 = vmul.f32 0.015625, %v1332_v51  ;;  %v1371_v38 = vmul.f32 %v3373_v37, %v3373_v37 }
 0x3c1   :  { %v3379_v2 = vsub.f32 %v3303_v58, %v1346_v29  ;;  %v1406_v48 = vsel %vm51_vm1, %v1371_v38, 0.0 }
 0x3c2   :  { %1407 = vadd.xlane.f32.xlu0 %v1406_v48 }
 0x3c3   :  { %v1372_v10 = vmul.f32 %v3379_v2, %v3379_v2 }
 0x3c5   :  { %v1409_v17 = vsel %vm51_vm1, %v1372_v10, 0.0 }
 0x3c6   :  { %1410 = vadd.xlane.f32.xlu1 %v1409_v17 }
 0x423   :  { %v1375_v35 = vpop.xlane.xlu1 %1374 }
 0x424   :  { %v1412_v18 = vmul.f32 0.015625, %v1375_v35 }
 0x426   :  { %v1425_v52 = vadd.f32 1e-05, %v1412_v18 }
 0x427   :  { %v1378_v53 = vpop.xlane.xlu0 %1377 }
 0x428   :  { %2384 = vrsqrt.f32 %v1425_v52  ;;  %v1413_v55 = vmul.f32 0.015625, %v1378_v53 }
 0x42a   :  { %v1426_v56 = vadd.f32 1e-05, %v1413_v55 }
 0x42b   :  { %v1381_v20 = vpop.xlane.xlu1 %1380 }
 0x42c   :  { %2386 = vrsqrt.f32 %v1426_v56  ;;  %v1414_v58 = vmul.f32 0.015625, %v1381_v20 }
 0x42e   :  { %v1427_v44 = vadd.f32 1e-05, %v1414_v58 }
 0x42f   :  { %v1384_v60 = vpop.xlane.xlu0 %1383 }
 0x430   :  { %2388 = vrsqrt.f32 %v1427_v44  ;;  %v1415_v61 = vmul.f32 0.015625, %v1384_v60 }
 0x432   :  { %v2385_v30 = vpop.eup %2384  ;;  %v1428_v1 = vadd.f32 1e-05, %v1415_v61 }
 0x433   :  { %v1451_v3 = vmul.f32 %v2385_v30, %v3308_v15  ;;  %v1387_v8 = vpop.xlane.xlu1 %1386 }
 0x434   :  { %2390 = vrsqrt.f32 %v1428_v1  ;;  %v1416_v46 = vmul.f32 0.015625, %v1387_v8 }
 0x435   :  { %1464 = vst.msk [vmem:[%s3453_s3] sm:$0xff] %vm51_vm1, %v1451_v3 }
 0x436   :  { %v2387_v5 = vpop.eup %2386  ;;  %v1429_v49 = vadd.f32 1e-05, %v1416_v46 }
 0x437   :  { %v1452_v9 = vmul.f32 %v2387_v5, %v3313_v19  ;;  %v1390_v50 = vpop.xlane.xlu0 %1389 }
 0x438   :  { %2392 = vrsqrt.f32 %v1429_v49  ;;  %v1417_v12 = vmul.f32 0.015625, %v1390_v50 }
 0x439   :  { %1465 = vst.msk [vmem:[%s3453_s3 + $0x8] sm:$0xff] %vm51_vm1, %v1452_v9 }
 0x43a   :  { %v2389_v15 = vpop.eup %2388  ;;  %v1430_v54 = vadd.f32 1e-05, %v1417_v12 }
 0x43b   :  { %v1453_v16 = vmul.f32 %v2389_v15, %v3319_v57  ;;  %v1393_v0 = vpop.xlane.xlu1 %1392 }
 0x43c   :  { %2394 = vrsqrt.f32 %v1430_v54  ;;  %v1418_v23 = vmul.f32 0.015625, %v1393_v0 }
 0x43d   :  { %1466 = vst.msk [vmem:[%s3453_s3 + $0x10] sm:$0xff] %vm51_vm1, %v1453_v16 }
 0x43e   :  { %v2391_v19 = vpop.eup %2390  ;;  %v1431_v6 = vadd.f32 1e-05, %v1418_v23 }
 0x43f   :  { %v1454_v59 = vmul.f32 %v2391_v19, %v3325_v21  ;;  %v1396_v62 = vpop.xlane.xlu0 %1395 }
 0x440   :  { %2396 = vrsqrt.f32 %v1431_v6  ;;  %v1419_v24 = vmul.f32 0.015625, %v1396_v62 }
 0x441   :  { %1467 = vst.msk [vmem:[%s3453_s3 + $0x18] sm:$0xff] %vm51_vm1, %v1454_v59 }
 0x442   :  { %v2393_v57 = vpop.eup %2392  ;;  %v1432_v28 = vadd.f32 1e-05, %v1419_v24 }
 0x443   :  { %v1455_v31 = vmul.f32 %v2393_v57, %v3331_v4  ;;  %v1399_v7 = vpop.xlane.xlu1 %1398 }
 0x444   :  { %2398 = vrsqrt.f32 %v1432_v28  ;;  %v1420_v33 = vmul.f32 0.015625, %v1399_v7 }
 0x445   :  { %1468 = vst.msk [vmem:[%s3453_s3 + $0x20] sm:$0xff] %vm51_vm1, %v1455_v31 }
 0x446   :  { %v2395_v21 = vpop.eup %2394  ;;  %v1433_v34 = vadd.f32 1e-05, %v1420_v33 }
 0x447   :  { %v1456_v36 = vmul.f32 %v2395_v21, %v3337_v11  ;;  %v1402_v14 = vpop.xlane.xlu0 %1401 }
 0x448   :  { %2400 = vrsqrt.f32 %v1433_v34  ;;  %v1421_v25 = vmul.f32 0.015625, %v1402_v14 }
 0x449   :  { %1469 = vst.msk [vmem:[%s3453_s3 + $0x28] sm:$0xff] %vm51_vm1, %v1456_v36 }
 0x44a   :  { %v2397_v4 = vpop.eup %2396  ;;  %v1434_v39 = vadd.f32 1e-05, %v1421_v25 }
 0x44b   :  { %v1457_v40 = vmul.f32 %v2397_v4, %v3343_v22  ;;  %v1405_v13 = vpop.xlane.xlu1 %1404 }
 0x44c   :  { %2402 = vrsqrt.f32 %v1434_v39  ;;  %v1422_v47 = vmul.f32 0.015625, %v1405_v13 }
 0x44d   :  { %1470 = vst.msk [vmem:[%s3453_s3 + $0x30] sm:$0xff] %vm51_vm1, %v1457_v40 }
 0x44e   :  { %v2399_v11 = vpop.eup %2398  ;;  %v1435_v27 = vadd.f32 1e-05, %v1422_v47 }
 0x44f   :  { %v1458_v43 = vmul.f32 %v2399_v11, %v3349_v26  ;;  %v1408_v32 = vpop.xlane.xlu0 %1407 }
 0x450   :  { %2404 = vrsqrt.f32 %v1435_v27  ;;  %v1423_v45 = vmul.f32 0.015625, %v1408_v32 }
 0x451   :  { %1471 = vst.msk [vmem:[%s3453_s3 + $0x38] sm:$0xff] %vm51_vm1, %v1458_v43 }
 0x452   :  { %v2401_v22 = vpop.eup %2400  ;;  %v1436_v51 = vadd.f32 1e-05, %v1423_v45 }
 0x453   :  { %v1459_v29 = vmul.f32 %v2401_v22, %v3355_v63  ;;  %v1411_v38 = vpop.xlane.xlu1 %1410 }
 0x454   :  { %2406 = vrsqrt.f32 %v1436_v51  ;;  %v1424_v48 = vmul.f32 0.015625, %v1411_v38 }
 0x455   :  { %1472 = vst.msk [vmem:[%s3453_s3 + $0x40] sm:$0xff] %vm51_vm1, %v1459_v29 }
 0x456   :  { %v2403_v26 = vpop.eup %2402  ;;  %v1437_v10 = vadd.f32 1e-05, %v1424_v48 }
 0x457   :  { %v1460_v17 = vmul.f32 %v2403_v26, %v3361_v41 }
 0x458   :  { %2408 = vrsqrt.f32 %v1437_v10 }
 0x459   :  { %1473 = vst.msk [vmem:[%s3453_s3 + $0x48] sm:$0xff] %vm51_vm1, %v1460_v17 }
 0x45a   :  { %v2405_v35 = vpop.eup %2404 }
 0x45b   :  { %v1461_v63 = vmul.f32 %v2405_v35, %v3367_v42 }
 0x45d   :  { %1474 = vst.msk [vmem:[%s3453_s3 + $0x50] sm:$0xff] %vm51_vm1, %v1461_v63 }
 0x45e   :  { %v2407_v18 = vpop.eup %2406 }
 0x45f   :  { %v1462_v52 = vmul.f32 %v2407_v18, %v3373_v37 }
 0x461   :  { %1475 = vst.msk [vmem:[%s3453_s3 + $0x58] sm:$0xff] %vm51_vm1, %v1462_v52 }
 0x462   :  { %v2409_v41 = vpop.eup %2408 }
 0x463   :  { %v1463_v53 = vmul.f32 %v2409_v41, %v3379_v2 }
 0x465   :  { %1476 = vst.msk [vmem:[%s3453_s3 + $0x60] sm:$0xff] %vm51_vm1, %v1463_v53 }

</bundles_post_ra>
